<compile_context>
chip_gen: v6e
topology: v6e:2x2x1
jax: 0.10.0
libtpu: 0.0.40
codegen_flags: <defaults>
</compile_context>

<pallas_src>
import jax
import jax.numpy as jnp
from jax import lax
from jax.experimental import pallas as pl
from jax.experimental.pallas import tpu as pltpu


# ----------------------------------------------------------------------------
# shared GRU recurrence body (works on whole VMEM blocks, returns values)
# ----------------------------------------------------------------------------
def _gru_recurrence_body(x_ref, h0_ref, wih_ref, whh_ref, bih_ref, bhh_ref):
    S, Hp = x_ref.shape
    # hoisted input projection (independent of h): one batched MXU matmul
    gi = jnp.dot(x_ref[...], wih_ref[...],
                 preferred_element_type=jnp.float32) + bih_ref[...]     # (S, 3Hp)
    whh = whh_ref[...]
    bhh_n = bhh_ref[...]            # only the 'new'-gate slice is non-zero

    h = h0_ref[...]                 # (1, Hp)
    rows = []
    for t in range(S):              # static unroll; collect rows for one dense store
        gh = jnp.dot(h, whh, preferred_element_type=jnp.float32) + bhh_n
        gi_t = gi[t:t + 1, :]
        r = jax.nn.sigmoid(gi_t[:, 0:Hp] + gh[:, 0:Hp])
        z = jax.nn.sigmoid(gi_t[:, Hp:2 * Hp] + gh[:, Hp:2 * Hp])
        n = jnp.tanh(gi_t[:, 2 * Hp:3 * Hp] + r * gh[:, 2 * Hp:3 * Hp])
        h = (1.0 - z) * n + z * h
        rows.append(h)
    return jnp.concatenate(rows, axis=0), h      # (S, Hp), (1, Hp)


def _log_softmax(logits):
    m = jnp.max(logits, axis=-1, keepdims=True)
    lse = m + jnp.log(jnp.sum(jnp.exp(logits - m), axis=-1, keepdims=True))
    return logits - lse


# ----------------------------------------------------------------------------
# kernel 1 (small path): fused recurrence + full vocab projection + log-softmax
# ----------------------------------------------------------------------------
def _fused_kernel(x_ref, h0_ref, wih_ref, whh_ref, bih_ref, bhh_ref,
                  wout_ref, bout_ref, logp_ref, hout_ref):
    hs, h_final = _gru_recurrence_body(x_ref, h0_ref, wih_ref, whh_ref,
                                       bih_ref, bhh_ref)
    hout_ref[...] = h_final
    w = wout_ref[...]
    logits = jnp.dot(hs.astype(w.dtype), w,
                     preferred_element_type=jnp.float32) + bout_ref[...]
    logp_ref[...] = _log_softmax(logits)


# ----------------------------------------------------------------------------
# kernel 2 (large path, step A): recurrence only — frees Wih/Whh VMEM before
# the vocab stream runs
# ----------------------------------------------------------------------------
def _gru_kernel(x_ref, h0_ref, wih_ref, whh_ref, bih_ref, bhh_ref,
                hs_ref, hout_ref):
    hs, h_final = _gru_recurrence_body(x_ref, h0_ref, wih_ref, whh_ref,
                                       bih_ref, bhh_ref)
    hs_ref[...] = hs            # single dense (S, Hp) store
    hout_ref[...] = h_final


# ----------------------------------------------------------------------------
# kernel 3 (large path, step B): single-pass streamed vocab projection with
# online log-sum-exp; normalization happens in the wrapper
# ----------------------------------------------------------------------------
def _vocab_stream_kernel(hs_ref, wout_ref, bout_ref,
                         logits_ref, lse_ref, m_ref, l_ref):
    j = pl.program_id(0)

    @pl.when(j == 0)
    def _():
        m_ref[...] = jnp.full(m_ref.shape, -jnp.inf, m_ref.dtype)
        l_ref[...] = jnp.zeros(l_ref.shape, l_ref.dtype)

    w = wout_ref[...]
    logits = jnp.dot(hs_ref[...].astype(w.dtype), w,
                     preferred_element_type=jnp.float32) + bout_ref[...]   # (S, tv)

    m_prev = m_ref[...]
    m_new = jnp.maximum(m_prev, jnp.max(logits, axis=-1, keepdims=True))
    l_ref[...] = (l_ref[...] * jnp.exp(m_prev - m_new)
                  + jnp.sum(jnp.exp(logits - m_new), axis=-1, keepdims=True))
    m_ref[...] = m_new
    logits_ref[...] = logits                 # unnormalized; normalized in wrapper

    @pl.when(j == pl.num_programs(0) - 1)
    def _():
        lse_ref[...] = m_ref[...] + jnp.log(l_ref[...])


# ----------------------------------------------------------------------------
# wrapper
# ----------------------------------------------------------------------------
def _round_up(x, m):
    return ((x + m - 1) // m) * m


def _pad_gates(w, H, Hp):
    """Pad each of the three gate blocks along the last (3H) axis to Hp."""
    parts = [w[..., g * H:(g + 1) * H] for g in range(3)]
    pad = [(0, 0)] * (w.ndim - 1) + [(0, Hp - H)]
    return jnp.concatenate([jnp.pad(p, pad) for p in parts], axis=-1)


def decoder_gru_forward(token_ids, hidden, params, *, tv=512,
                        wout_dtype=jnp.float32,
                        fused_vmem_budget=8 * 2 ** 20):
    f32 = jnp.float32
    emb = params["emb"].astype(f32)
    V, H = emb.shape
    S = token_ids.shape[-1]
    ids = token_ids.reshape(S).astype(jnp.int32)

    Hp = _round_up(H, 128)

    # embedding gather + ReLU in the wrapper: only the (S, H) activations ever
    # enter VMEM, never the (V, H) table.
    x = jnp.maximum(emb[ids], 0.0)
    x = jnp.pad(x, ((0, 0), (0, Hp - H)))
    h0 = jnp.pad(hidden.reshape(1, H).astype(f32), ((0, 0), (0, Hp - H)))

    wih = jnp.pad(_pad_gates(params["wih"].astype(f32), H, Hp), ((0, Hp - H), (0, 0)))
    whh = jnp.pad(_pad_gates(params["whh"].astype(f32), H, Hp), ((0, Hp - H), (0, 0)))
    bih = _pad_gates(params["bih"].astype(f32).reshape(1, 3 * H), H, Hp)
    bhh = _pad_gates(params["bhh"].astype(f32).reshape(1, 3 * H), H, Hp)
    # fold reset/update hidden biases into the hoisted input bias
    bih = bih.at[:, :2 * Hp].add(bhh[:, :2 * Hp])
    bhh = bhh.at[:, :2 * Hp].set(0.0)

    Vp_min = _round_up(V, 128)
    wbytes = jnp.dtype(wout_dtype).itemsize

    def make_wout(Vp):
        w = jnp.pad(params["wout"].astype(f32), ((0, Hp - H), (0, Vp - V)))
        b = jnp.pad(params["bout"].astype(f32).reshape(1, V),
                    ((0, 0), (0, Vp - V)), constant_values=-1e30)
        return w.astype(wout_dtype), b

    full2 = lambda i: (0, 0)

    # rough VMEM estimate of the fully-resident fused path (x2: pipeline bufs)
    fused_bytes = 2 * (S * Hp * 4 + Hp * 4 + 2 * Hp * 3 * Hp * 4 + 2 * 3 * Hp * 4
                       + Hp * Vp_min * wbytes + Vp_min * 4
                       + S * Vp_min * 4 + Hp * 4)
    use_fused = fused_bytes <= fused_vmem_budget

    if use_fused:
        # --------- small path: one pallas_call, one grid step ----------------
        Vp = Vp_min
        wout, bout = make_wout(Vp)
        logp, h_out = pl.pallas_call(
            _fused_kernel,
            out_shape=(jax.ShapeDtypeStruct((S, Vp), f32),
                       jax.ShapeDtypeStruct((1, Hp), f32)),
            grid_spec=pltpu.PrefetchScalarGridSpec(
                num_scalar_prefetch=0,
                grid=(1,),
                in_specs=[pl.BlockSpec((S, Hp), full2),          # x = relu(emb[ids])
                          pl.BlockSpec((1, Hp), full2),          # h0
                          pl.BlockSpec((Hp, 3 * Hp), full2),     # wih
                          pl.BlockSpec((Hp, 3 * Hp), full2),     # whh
                          pl.BlockSpec((1, 3 * Hp), full2),      # bih (+ folded bhh_rz)
                          pl.BlockSpec((1, 3 * Hp), full2),      # bhh ('new' gate only)
                          pl.BlockSpec((Hp, Vp), full2),         # wout (resident)
                          pl.BlockSpec((1, Vp), full2)],         # bout
                out_specs=(pl.BlockSpec((S, Vp), full2),
                           pl.BlockSpec((1, Hp), full2))),
            compiler_params=pltpu.CompilerParams(
                dimension_semantics=("arbitrary",)),
        )(x, h0, wih, whh, bih, bhh, wout, bout)
        return logp[:, :V], h_out[:, :H].reshape(1, 1, H)

    # --------- large path A: recurrence in its own call -----------------------
    hs, h_out = pl.pallas_call(
        _gru_kernel,
        out_shape=(jax.ShapeDtypeStruct((S, Hp), f32),
                   jax.ShapeDtypeStruct((1, Hp), f32)),
        grid_spec=pltpu.PrefetchScalarGridSpec(
            num_scalar_prefetch=0,
            grid=(1,),
            in_specs=[pl.BlockSpec((S, Hp), full2),
                      pl.BlockSpec((1, Hp), full2),
                      pl.BlockSpec((Hp, 3 * Hp), full2),
                      pl.BlockSpec((Hp, 3 * Hp), full2),
                      pl.BlockSpec((1, 3 * Hp), full2),
                      pl.BlockSpec((1, 3 * Hp), full2)],
            out_specs=(pl.BlockSpec((S, Hp), full2),
                       pl.BlockSpec((1, Hp), full2))),
        compiler_params=pltpu.CompilerParams(
            dimension_semantics=("arbitrary",)),
    )(x, h0, wih, whh, bih, bhh)

    # --------- large path B: single-pass streamed vocab projection ------------
    tv_eff = max(128, min(_round_up(tv, 128), Vp_min))
    Vp = _round_up(V, tv_eff)
    NV = Vp // tv_eff
    wout, bout = make_wout(Vp)

    logits, lse = pl.pallas_call(
        _vocab_stream_kernel,
        out_shape=(jax.ShapeDtypeStruct((S, Vp), f32),
                   jax.ShapeDtypeStruct((S, 1), f32)),
        grid_spec=pltpu.PrefetchScalarGridSpec(
            num_scalar_prefetch=0,
            grid=(NV,),
            in_specs=[pl.BlockSpec((S, Hp), full2),                    # hs (resident, tiny)
                      pl.BlockSpec((Hp, tv_eff), lambda j: (0, j)),    # wout tile (streamed once)
                      pl.BlockSpec((1, tv_eff), lambda j: (0, j))],    # bout tile
            out_specs=(pl.BlockSpec((S, tv_eff), lambda j: (0, j)),    # unnormalized logits
                       pl.BlockSpec((S, 1), full2)),                   # lse (written once)
            scratch_shapes=[pltpu.VMEM((S, 1), f32),                   # running row max
                            pltpu.VMEM((S, 1), f32)]),                 # running row sum-exp
        compiler_params=pltpu.CompilerParams(
            dimension_semantics=("arbitrary",)),
    )(hs, wout, bout)

    logp = logits - lse                                 # (S, Vp) - (S, 1) broadcast
    return logp[:, :V], h_out[:, :H].reshape(1, 1, H)


# ----------------------------------------------------------------------------
# pure-JAX reference of the PyTorch forward, for correctness checking
# ----------------------------------------------------------------------------
def reference_forward(token_ids, hidden, params):
    V, H = params["emb"].shape
    ids = token_ids.reshape(-1)
    x = jnp.maximum(params["emb"][ids], 0.0)          # (S, H)
    h = hidden.reshape(1, H)
    hs = []
    for t in range(ids.shape[0]):
        x_t = x[t][None, :]
        gi = x_t @ params["wih"] + params["bih"]
        gh = h @ params["whh"] + params["bhh"]
        r = jax.nn.sigmoid(gi[:, 0:H] + gh[:, 0:H])
        z = jax.nn.sigmoid(gi[:, H:2 * H] + gh[:, H:2 * H])
        n = jnp.tanh(gi[:, 2 * H:3 * H] + r * gh[:, 2 * H:3 * H])
        h = (1.0 - z) * n + z * h
        hs.append(h[0])
    hs = jnp.stack(hs, axis=0)                        # (S, H)
    logits = hs @ params["wout"] + params["bout"]     # (S, V)
    logp = jax.nn.log_softmax(logits, axis=-1)
    return logp, h.reshape(1, 1, H)


def init_params(key, vocab_size, hidden_size):
    ks = jax.random.split(key, 7)
    s = 0.1
    return {
        # nn.Embedding(V, H).weight -> (V, H)
        "emb": s * jax.random.normal(ks[0], (vocab_size, hidden_size), jnp.float32),
        # nn.GRU weight_ih_l0 (3H, H) / weight_hh_l0 (3H, H), stored transposed
        "wih": s * jax.random.normal(ks[1], (hidden_size, 3 * hidden_size), jnp.float32),
        "whh": s * jax.random.normal(ks[2], (hidden_size, 3 * hidden_size), jnp.float32),
        "bih": s * jax.random.normal(ks[3], (1, 3 * hidden_size), jnp.float32),
        "bhh": s * jax.random.normal(ks[4], (1, 3 * hidden_size), jnp.float32),
        # nn.Linear(H, V).weight (V, H) stored transposed -> (H, V); bias (1, V)
        "wout": s * jax.random.normal(ks[5], (hidden_size, vocab_size), jnp.float32),
        "bout": s * jax.random.normal(ks[6], (1, vocab_size), jnp.float32),
    }


if __name__ == "__main__":
    VOCAB, HIDDEN, SEQ = 256, 32, 8

    key = jax.random.PRNGKey(0)
    pkey, ikey = jax.random.split(key)
    params = init_params(pkey, VOCAB, HIDDEN)

    # input: (batch=1, seq) token ids; hidden: (1, 1, H) as in inithidden()
    token_ids = jax.random.randint(ikey, (1, SEQ), 0, VOCAB, dtype=jnp.int32)
    hidden0 = jnp.zeros((1, 1, HIDDEN), jnp.float32)

    ref_logp, ref_h = reference_forward(token_ids, hidden0, params)

    # 1) fused single-grid-step path (small sizes), f32 weights
    logp, h_out = decoder_gru_forward(token_ids, hidden0, params)
    jax.block_until_ready((logp, h_out))
    assert logp.shape == (SEQ, VOCAB) and h_out.shape == (1, 1, HIDDEN)
    assert jnp.allclose(logp, ref_logp, atol=1e-3, rtol=1e-3)
    assert jnp.allclose(h_out, ref_h, atol=1e-3, rtol=1e-3)

    # 2) fused path with bf16 vocab weights (v6e/v7x HBM + MXU optimization)
    logp_bf, h_bf = decoder_gru_forward(token_ids, hidden0, params,
                                        wout_dtype=jnp.bfloat16)
    jax.block_until_ready((logp_bf, h_bf))
    assert jnp.allclose(logp_bf, ref_logp, atol=5e-2, rtol=5e-2)
    assert jnp.allclose(h_bf, ref_h, atol=1e-3, rtol=1e-3)

    # 3) streamed single-pass path (large-vocab structure), forced at small size
    logp_s, h_s = decoder_gru_forward(token_ids, hidden0, params,
                                      tv=128, fused_vmem_budget=0)
    jax.block_until_ready((logp_s, h_s))
    assert jnp.allclose(logp_s, ref_logp, atol=1e-3, rtol=1e-3)
    assert jnp.allclose(h_s, ref_h, atol=1e-3, rtol=1e-3)

    print("KERNEL_OK")
</pallas_src>

<mosaic_0001>
module attributes {stable_mosaic.version = 11 : i64} {
  func.func @_fused_kernel(%arg0: i32, %arg1: memref<8x128xf32, #tpu.memory_space<vmem>>, %arg2: memref<1x128xf32, #tpu.memory_space<vmem>>, %arg3: memref<128x384xf32, #tpu.memory_space<vmem>>, %arg4: memref<128x384xf32, #tpu.memory_space<vmem>>, %arg5: memref<1x384xf32, #tpu.memory_space<vmem>>, %arg6: memref<1x384xf32, #tpu.memory_space<vmem>>, %arg7: memref<128x256xf32, #tpu.memory_space<vmem>>, %arg8: memref<1x256xf32, #tpu.memory_space<vmem>>, %arg9: memref<8x256xf32, #tpu.memory_space<vmem>>, %arg10: memref<1x128xf32, #tpu.memory_space<vmem>>) attributes {dimension_semantics = [#tpu.dimension_semantics<arbitrary>], iteration_bounds = array<i64: 1>, scalar_prefetch = 0 : i64, scratch_operands = 0 : i64, tpu.core_type = #tpu.core_type<tc>, window_params = [{pipeline_mode = #tpu.pipeline_mode<synchronous>, transform_indices = @transform_0, window_bounds = array<i64: 8, 128>}, {pipeline_mode = #tpu.pipeline_mode<synchronous>, transform_indices = @transform_1, window_bounds = array<i64: 1, 128>}, {pipeline_mode = #tpu.pipeline_mode<synchronous>, transform_indices = @transform_2, window_bounds = array<i64: 128, 384>}, {pipeline_mode = #tpu.pipeline_mode<synchronous>, transform_indices = @transform_3, window_bounds = array<i64: 128, 384>}, {pipeline_mode = #tpu.pipeline_mode<synchronous>, transform_indices = @transform_4, window_bounds = array<i64: 1, 384>}, {pipeline_mode = #tpu.pipeline_mode<synchronous>, transform_indices = @transform_5, window_bounds = array<i64: 1, 384>}, {pipeline_mode = #tpu.pipeline_mode<synchronous>, transform_indices = @transform_6, window_bounds = array<i64: 128, 256>}, {pipeline_mode = #tpu.pipeline_mode<synchronous>, transform_indices = @transform_7, window_bounds = array<i64: 1, 256>}, {pipeline_mode = #tpu.pipeline_mode<synchronous>, transform_indices = @transform_8, window_bounds = array<i64: 8, 256>}, {pipeline_mode = #tpu.pipeline_mode<synchronous>, transform_indices = @transform_9, window_bounds = array<i64: 1, 128>}]} {
    %c0 = arith.constant 0 : index
    %c0_0 = arith.constant 0 : index
    %0 = vector.load %arg1[%c0, %c0_0] : memref<8x128xf32, #tpu.memory_space<vmem>>, vector<8x128xf32>
    %c0_1 = arith.constant 0 : index
    %c0_2 = arith.constant 0 : index
    %1 = vector.load %arg3[%c0_1, %c0_2] : memref<128x384xf32, #tpu.memory_space<vmem>>, vector<128x384xf32>
    %cst = arith.constant dense<0.000000e+00> : vector<8x384xf32>
    %2 = tpu.matmul %0, %1, %cst {dimension_numbers = #tpu.dot_dimension_numbers<[1], [0], [0], [1], [0, 0, 1, 1], [], []>} : vector<8x128xf32>, vector<128x384xf32>, vector<8x384xf32> -> vector<8x384xf32>
    %c0_3 = arith.constant 0 : index
    %c0_4 = arith.constant 0 : index
    %3 = vector.load %arg5[%c0_3, %c0_4] : memref<1x384xf32, #tpu.memory_space<vmem>>, vector<1x384xf32>
    %4 = vector.broadcast %3 : vector<1x384xf32> to vector<8x384xf32>
    %5 = arith.addf %2, %4 : vector<8x384xf32>
    %c0_5 = arith.constant 0 : index
    %c0_6 = arith.constant 0 : index
    %6 = vector.load %arg4[%c0_5, %c0_6] : memref<128x384xf32, #tpu.memory_space<vmem>>, vector<128x384xf32>
    %c0_7 = arith.constant 0 : index
    %c0_8 = arith.constant 0 : index
    %7 = vector.load %arg6[%c0_7, %c0_8] : memref<1x384xf32, #tpu.memory_space<vmem>>, vector<1x384xf32>
    %c0_9 = arith.constant 0 : index
    %c0_10 = arith.constant 0 : index
    %8 = vector.load %arg2[%c0_9, %c0_10] : memref<1x128xf32, #tpu.memory_space<vmem>>, vector<1x128xf32>
    %cst_11 = arith.constant dense<0.000000e+00> : vector<1x384xf32>
    %9 = tpu.matmul %8, %6, %cst_11 {dimension_numbers = #tpu.dot_dimension_numbers<[1], [0], [0], [1], [0, 0, 1, 1], [], []>} : vector<1x128xf32>, vector<128x384xf32>, vector<1x384xf32> -> vector<1x384xf32>
    %10 = arith.addf %9, %7 : vector<1x384xf32>
    %11 = vector.extract_strided_slice %5 {offsets = [0, 0], sizes = [1, 384], strides = [1, 1]} : vector<8x384xf32> to vector<1x384xf32>
    %12 = vector.extract_strided_slice %11 {offsets = [0, 0], sizes = [1, 128], strides = [1, 1]} : vector<1x384xf32> to vector<1x128xf32>
    %13 = vector.extract_strided_slice %10 {offsets = [0, 0], sizes = [1, 128], strides = [1, 1]} : vector<1x384xf32> to vector<1x128xf32>
    %14 = arith.addf %12, %13 : vector<1x128xf32>
    %15 = arith.negf %14 : vector<1x128xf32>
    %16 = math.exp %15 : vector<1x128xf32>
    %cst_12 = arith.constant 1.000000e+00 : f32
    %17 = vector.broadcast %cst_12 : f32 to vector<1x128xf32>
    %18 = arith.addf %17, %16 : vector<1x128xf32>
    %19 = arith.divf %17, %18 : vector<1x128xf32>
    %20 = vector.extract_strided_slice %11 {offsets = [0, 128], sizes = [1, 128], strides = [1, 1]} : vector<1x384xf32> to vector<1x128xf32>
    %21 = vector.extract_strided_slice %10 {offsets = [0, 128], sizes = [1, 128], strides = [1, 1]} : vector<1x384xf32> to vector<1x128xf32>
    %22 = arith.addf %20, %21 : vector<1x128xf32>
    %23 = arith.negf %22 : vector<1x128xf32>
    %24 = math.exp %23 : vector<1x128xf32>
    %cst_13 = arith.constant 1.000000e+00 : f32
    %25 = vector.broadcast %cst_13 : f32 to vector<1x128xf32>
    %26 = arith.addf %25, %24 : vector<1x128xf32>
    %27 = arith.divf %25, %26 : vector<1x128xf32>
    %28 = vector.extract_strided_slice %11 {offsets = [0, 256], sizes = [1, 128], strides = [1, 1]} : vector<1x384xf32> to vector<1x128xf32>
    %29 = vector.extract_strided_slice %10 {offsets = [0, 256], sizes = [1, 128], strides = [1, 1]} : vector<1x384xf32> to vector<1x128xf32>
    %30 = arith.mulf %19, %29 : vector<1x128xf32>
    %31 = arith.addf %28, %30 : vector<1x128xf32>
    %32 = math.tanh %31 : vector<1x128xf32>
    %cst_14 = arith.constant 1.000000e+00 : f32
    %33 = vector.broadcast %cst_14 : f32 to vector<1x128xf32>
    %34 = arith.subf %33, %27 : vector<1x128xf32>
    %35 = arith.mulf %34, %32 : vector<1x128xf32>
    %36 = arith.mulf %27, %8 : vector<1x128xf32>
    %37 = arith.addf %35, %36 : vector<1x128xf32>
    %cst_15 = arith.constant dense<0.000000e+00> : vector<1x384xf32>
    %38 = tpu.matmul %37, %6, %cst_15 {dimension_numbers = #tpu.dot_dimension_numbers<[1], [0], [0], [1], [0, 0, 1, 1], [], []>} : vector<1x128xf32>, vector<128x384xf32>, vector<1x384xf32> -> vector<1x384xf32>
    %39 = arith.addf %38, %7 : vector<1x384xf32>
    %40 = vector.extract_strided_slice %5 {offsets = [1, 0], sizes = [1, 384], strides = [1, 1]} : vector<8x384xf32> to vector<1x384xf32>
    %41 = vector.extract_strided_slice %40 {offsets = [0, 0], sizes = [1, 128], strides = [1, 1]} : vector<1x384xf32> to vector<1x128xf32>
    %42 = vector.extract_strided_slice %39 {offsets = [0, 0], sizes = [1, 128], strides = [1, 1]} : vector<1x384xf32> to vector<1x128xf32>
    %43 = arith.addf %41, %42 : vector<1x128xf32>
    %44 = arith.negf %43 : vector<1x128xf32>
    %45 = math.exp %44 : vector<1x128xf32>
    %cst_16 = arith.constant 1.000000e+00 : f32
    %46 = vector.broadcast %cst_16 : f32 to vector<1x128xf32>
    %47 = arith.addf %46, %45 : vector<1x128xf32>
    %48 = arith.divf %46, %47 : vector<1x128xf32>
    %49 = vector.extract_strided_slice %40 {offsets = [0, 128], sizes = [1, 128], strides = [1, 1]} : vector<1x384xf32> to vector<1x128xf32>
    %50 = vector.extract_strided_slice %39 {offsets = [0, 128], sizes = [1, 128], strides = [1, 1]} : vector<1x384xf32> to vector<1x128xf32>
    %51 = arith.addf %49, %50 : vector<1x128xf32>
    %52 = arith.negf %51 : vector<1x128xf32>
    %53 = math.exp %52 : vector<1x128xf32>
    %cst_17 = arith.constant 1.000000e+00 : f32
    %54 = vector.broadcast %cst_17 : f32 to vector<1x128xf32>
    %55 = arith.addf %54, %53 : vector<1x128xf32>
    %56 = arith.divf %54, %55 : vector<1x128xf32>
    %57 = vector.extract_strided_slice %40 {offsets = [0, 256], sizes = [1, 128], strides = [1, 1]} : vector<1x384xf32> to vector<1x128xf32>
    %58 = vector.extract_strided_slice %39 {offsets = [0, 256], sizes = [1, 128], strides = [1, 1]} : vector<1x384xf32> to vector<1x128xf32>
    %59 = arith.mulf %48, %58 : vector<1x128xf32>
    %60 = arith.addf %57, %59 : vector<1x128xf32>
    %61 = math.tanh %60 : vector<1x128xf32>
    %cst_18 = arith.constant 1.000000e+00 : f32
    %62 = vector.broadcast %cst_18 : f32 to vector<1x128xf32>
    %63 = arith.subf %62, %56 : vector<1x128xf32>
    %64 = arith.mulf %63, %61 : vector<1x128xf32>
    %65 = arith.mulf %56, %37 : vector<1x128xf32>
    %66 = arith.addf %64, %65 : vector<1x128xf32>
    %cst_19 = arith.constant dense<0.000000e+00> : vector<1x384xf32>
    %67 = tpu.matmul %66, %6, %cst_19 {dimension_numbers = #tpu.dot_dimension_numbers<[1], [0], [0], [1], [0, 0, 1, 1], [], []>} : vector<1x128xf32>, vector<128x384xf32>, vector<1x384xf32> -> vector<1x384xf32>
    %68 = arith.addf %67, %7 : vector<1x384xf32>
    %69 = vector.extract_strided_slice %5 {offsets = [2, 0], sizes = [1, 384], strides = [1, 1]} : vector<8x384xf32> to vector<1x384xf32>
    %70 = vector.extract_strided_slice %69 {offsets = [0, 0], sizes = [1, 128], strides = [1, 1]} : vector<1x384xf32> to vector<1x128xf32>
    %71 = vector.extract_strided_slice %68 {offsets = [0, 0], sizes = [1, 128], strides = [1, 1]} : vector<1x384xf32> to vector<1x128xf32>
    %72 = arith.addf %70, %71 : vector<1x128xf32>
    %73 = arith.negf %72 : vector<1x128xf32>
    %74 = math.exp %73 : vector<1x128xf32>
    %cst_20 = arith.constant 1.000000e+00 : f32
    %75 = vector.broadcast %cst_20 : f32 to vector<1x128xf32>
    %76 = arith.addf %75, %74 : vector<1x128xf32>
    %77 = arith.divf %75, %76 : vector<1x128xf32>
    %78 = vector.extract_strided_slice %69 {offsets = [0, 128], sizes = [1, 128], strides = [1, 1]} : vector<1x384xf32> to vector<1x128xf32>
    %79 = vector.extract_strided_slice %68 {offsets = [0, 128], sizes = [1, 128], strides = [1, 1]} : vector<1x384xf32> to vector<1x128xf32>
    %80 = arith.addf %78, %79 : vector<1x128xf32>
    %81 = arith.negf %80 : vector<1x128xf32>
    %82 = math.exp %81 : vector<1x128xf32>
    %cst_21 = arith.constant 1.000000e+00 : f32
    %83 = vector.broadcast %cst_21 : f32 to vector<1x128xf32>
    %84 = arith.addf %83, %82 : vector<1x128xf32>
    %85 = arith.divf %83, %84 : vector<1x128xf32>
    %86 = vector.extract_strided_slice %69 {offsets = [0, 256], sizes = [1, 128], strides = [1, 1]} : vector<1x384xf32> to vector<1x128xf32>
    %87 = vector.extract_strided_slice %68 {offsets = [0, 256], sizes = [1, 128], strides = [1, 1]} : vector<1x384xf32> to vector<1x128xf32>
    %88 = arith.mulf %77, %87 : vector<1x128xf32>
    %89 = arith.addf %86, %88 : vector<1x128xf32>
    %90 = math.tanh %89 : vector<1x128xf32>
    %cst_22 = arith.constant 1.000000e+00 : f32
    %91 = vector.broadcast %cst_22 : f32 to vector<1x128xf32>
    %92 = arith.subf %91, %85 : vector<1x128xf32>
    %93 = arith.mulf %92, %90 : vector<1x128xf32>
    %94 = arith.mulf %85, %66 : vector<1x128xf32>
    %95 = arith.addf %93, %94 : vector<1x128xf32>
    %cst_23 = arith.constant dense<0.000000e+00> : vector<1x384xf32>
    %96 = tpu.matmul %95, %6, %cst_23 {dimension_numbers = #tpu.dot_dimension_numbers<[1], [0], [0], [1], [0, 0, 1, 1], [], []>} : vector<1x128xf32>, vector<128x384xf32>, vector<1x384xf32> -> vector<1x384xf32>
    %97 = arith.addf %96, %7 : vector<1x384xf32>
    %98 = vector.extract_strided_slice %5 {offsets = [3, 0], sizes = [1, 384], strides = [1, 1]} : vector<8x384xf32> to vector<1x384xf32>
    %99 = vector.extract_strided_slice %98 {offsets = [0, 0], sizes = [1, 128], strides = [1, 1]} : vector<1x384xf32> to vector<1x128xf32>
    %100 = vector.extract_strided_slice %97 {offsets = [0, 0], sizes = [1, 128], strides = [1, 1]} : vector<1x384xf32> to vector<1x128xf32>
    %101 = arith.addf %99, %100 : vector<1x128xf32>
    %102 = arith.negf %101 : vector<1x128xf32>
    %103 = math.exp %102 : vector<1x128xf32>
    %cst_24 = arith.constant 1.000000e+00 : f32
    %104 = vector.broadcast %cst_24 : f32 to vector<1x128xf32>
    %105 = arith.addf %104, %103 : vector<1x128xf32>
    %106 = arith.divf %104, %105 : vector<1x128xf32>
    %107 = vector.extract_strided_slice %98 {offsets = [0, 128], sizes = [1, 128], strides = [1, 1]} : vector<1x384xf32> to vector<1x128xf32>
    %108 = vector.extract_strided_slice %97 {offsets = [0, 128], sizes = [1, 128], strides = [1, 1]} : vector<1x384xf32> to vector<1x128xf32>
    %109 = arith.addf %107, %108 : vector<1x128xf32>
    %110 = arith.negf %109 : vector<1x128xf32>
    %111 = math.exp %110 : vector<1x128xf32>
    %cst_25 = arith.constant 1.000000e+00 : f32
    %112 = vector.broadcast %cst_25 : f32 to vector<1x128xf32>
    %113 = arith.addf %112, %111 : vector<1x128xf32>
    %114 = arith.divf %112, %113 : vector<1x128xf32>
    %115 = vector.extract_strided_slice %98 {offsets = [0, 256], sizes = [1, 128], strides = [1, 1]} : vector<1x384xf32> to vector<1x128xf32>
    %116 = vector.extract_strided_slice %97 {offsets = [0, 256], sizes = [1, 128], strides = [1, 1]} : vector<1x384xf32> to vector<1x128xf32>
    %117 = arith.mulf %106, %116 : vector<1x128xf32>
    %118 = arith.addf %115, %117 : vector<1x128xf32>
    %119 = math.tanh %118 : vector<1x128xf32>
    %cst_26 = arith.constant 1.000000e+00 : f32
    %120 = vector.broadcast %cst_26 : f32 to vector<1x128xf32>
    %121 = arith.subf %120, %114 : vector<1x128xf32>
    %122 = arith.mulf %121, %119 : vector<1x128xf32>
    %123 = arith.mulf %114, %95 : vector<1x128xf32>
    %124 = arith.addf %122, %123 : vector<1x128xf32>
    %cst_27 = arith.constant dense<0.000000e+00> : vector<1x384xf32>
    %125 = tpu.matmul %124, %6, %cst_27 {dimension_numbers = #tpu.dot_dimension_numbers<[1], [0], [0], [1], [0, 0, 1, 1], [], []>} : vector<1x128xf32>, vector<128x384xf32>, vector<1x384xf32> -> vector<1x384xf32>
    %126 = arith.addf %125, %7 : vector<1x384xf32>
    %127 = vector.extract_strided_slice %5 {offsets = [4, 0], sizes = [1, 384], strides = [1, 1]} : vector<8x384xf32> to vector<1x384xf32>
    %128 = vector.extract_strided_slice %127 {offsets = [0, 0], sizes = [1, 128], strides = [1, 1]} : vector<1x384xf32> to vector<1x128xf32>
    %129 = vector.extract_strided_slice %126 {offsets = [0, 0], sizes = [1, 128], strides = [1, 1]} : vector<1x384xf32> to vector<1x128xf32>
    %130 = arith.addf %128, %129 : vector<1x128xf32>
    %131 = arith.negf %130 : vector<1x128xf32>
    %132 = math.exp %131 : vector<1x128xf32>
    %cst_28 = arith.constant 1.000000e+00 : f32
    %133 = vector.broadcast %cst_28 : f32 to vector<1x128xf32>
    %134 = arith.addf %133, %132 : vector<1x128xf32>
    %135 = arith.divf %133, %134 : vector<1x128xf32>
    %136 = vector.extract_strided_slice %127 {offsets = [0, 128], sizes = [1, 128], strides = [1, 1]} : vector<1x384xf32> to vector<1x128xf32>
    %137 = vector.extract_strided_slice %126 {offsets = [0, 128], sizes = [1, 128], strides = [1, 1]} : vector<1x384xf32> to vector<1x128xf32>
    %138 = arith.addf %136, %137 : vector<1x128xf32>
    %139 = arith.negf %138 : vector<1x128xf32>
    %140 = math.exp %139 : vector<1x128xf32>
    %cst_29 = arith.constant 1.000000e+00 : f32
    %141 = vector.broadcast %cst_29 : f32 to vector<1x128xf32>
    %142 = arith.addf %141, %140 : vector<1x128xf32>
    %143 = arith.divf %141, %142 : vector<1x128xf32>
    %144 = vector.extract_strided_slice %127 {offsets = [0, 256], sizes = [1, 128], strides = [1, 1]} : vector<1x384xf32> to vector<1x128xf32>
    %145 = vector.extract_strided_slice %126 {offsets = [0, 256], sizes = [1, 128], strides = [1, 1]} : vector<1x384xf32> to vector<1x128xf32>
    %146 = arith.mulf %135, %145 : vector<1x128xf32>
    %147 = arith.addf %144, %146 : vector<1x128xf32>
    %148 = math.tanh %147 : vector<1x128xf32>
    %cst_30 = arith.constant 1.000000e+00 : f32
    %149 = vector.broadcast %cst_30 : f32 to vector<1x128xf32>
    %150 = arith.subf %149, %143 : vector<1x128xf32>
    %151 = arith.mulf %150, %148 : vector<1x128xf32>
    %152 = arith.mulf %143, %124 : vector<1x128xf32>
    %153 = arith.addf %151, %152 : vector<1x128xf32>
    %cst_31 = arith.constant dense<0.000000e+00> : vector<1x384xf32>
    %154 = tpu.matmul %153, %6, %cst_31 {dimension_numbers = #tpu.dot_dimension_numbers<[1], [0], [0], [1], [0, 0, 1, 1], [], []>} : vector<1x128xf32>, vector<128x384xf32>, vector<1x384xf32> -> vector<1x384xf32>
    %155 = arith.addf %154, %7 : vector<1x384xf32>
    %156 = vector.extract_strided_slice %5 {offsets = [5, 0], sizes = [1, 384], strides = [1, 1]} : vector<8x384xf32> to vector<1x384xf32>
    %157 = vector.extract_strided_slice %156 {offsets = [0, 0], sizes = [1, 128], strides = [1, 1]} : vector<1x384xf32> to vector<1x128xf32>
    %158 = vector.extract_strided_slice %155 {offsets = [0, 0], sizes = [1, 128], strides = [1, 1]} : vector<1x384xf32> to vector<1x128xf32>
    %159 = arith.addf %157, %158 : vector<1x128xf32>
    %160 = arith.negf %159 : vector<1x128xf32>
    %161 = math.exp %160 : vector<1x128xf32>
    %cst_32 = arith.constant 1.000000e+00 : f32
    %162 = vector.broadcast %cst_32 : f32 to vector<1x128xf32>
    %163 = arith.addf %162, %161 : vector<1x128xf32>
    %164 = arith.divf %162, %163 : vector<1x128xf32>
    %165 = vector.extract_strided_slice %156 {offsets = [0, 128], sizes = [1, 128], strides = [1, 1]} : vector<1x384xf32> to vector<1x128xf32>
    %166 = vector.extract_strided_slice %155 {offsets = [0, 128], sizes = [1, 128], strides = [1, 1]} : vector<1x384xf32> to vector<1x128xf32>
    %167 = arith.addf %165, %166 : vector<1x128xf32>
    %168 = arith.negf %167 : vector<1x128xf32>
    %169 = math.exp %168 : vector<1x128xf32>
    %cst_33 = arith.constant 1.000000e+00 : f32
    %170 = vector.broadcast %cst_33 : f32 to vector<1x128xf32>
    %171 = arith.addf %170, %169 : vector<1x128xf32>
    %172 = arith.divf %170, %171 : vector<1x128xf32>
    %173 = vector.extract_strided_slice %156 {offsets = [0, 256], sizes = [1, 128], strides = [1, 1]} : vector<1x384xf32> to vector<1x128xf32>
    %174 = vector.extract_strided_slice %155 {offsets = [0, 256], sizes = [1, 128], strides = [1, 1]} : vector<1x384xf32> to vector<1x128xf32>
    %175 = arith.mulf %164, %174 : vector<1x128xf32>
    %176 = arith.addf %173, %175 : vector<1x128xf32>
    %177 = math.tanh %176 : vector<1x128xf32>
    %cst_34 = arith.constant 1.000000e+00 : f32
    %178 = vector.broadcast %cst_34 : f32 to vector<1x128xf32>
    %179 = arith.subf %178, %172 : vector<1x128xf32>
    %180 = arith.mulf %179, %177 : vector<1x128xf32>
    %181 = arith.mulf %172, %153 : vector<1x128xf32>
    %182 = arith.addf %180, %181 : vector<1x128xf32>
    %cst_35 = arith.constant dense<0.000000e+00> : vector<1x384xf32>
    %183 = tpu.matmul %182, %6, %cst_35 {dimension_numbers = #tpu.dot_dimension_numbers<[1], [0], [0], [1], [0, 0, 1, 1], [], []>} : vector<1x128xf32>, vector<128x384xf32>, vector<1x384xf32> -> vector<1x384xf32>
    %184 = arith.addf %183, %7 : vector<1x384xf32>
    %185 = vector.extract_strided_slice %5 {offsets = [6, 0], sizes = [1, 384], strides = [1, 1]} : vector<8x384xf32> to vector<1x384xf32>
    %186 = vector.extract_strided_slice %185 {offsets = [0, 0], sizes = [1, 128], strides = [1, 1]} : vector<1x384xf32> to vector<1x128xf32>
    %187 = vector.extract_strided_slice %184 {offsets = [0, 0], sizes = [1, 128], strides = [1, 1]} : vector<1x384xf32> to vector<1x128xf32>
    %188 = arith.addf %186, %187 : vector<1x128xf32>
    %189 = arith.negf %188 : vector<1x128xf32>
    %190 = math.exp %189 : vector<1x128xf32>
    %cst_36 = arith.constant 1.000000e+00 : f32
    %191 = vector.broadcast %cst_36 : f32 to vector<1x128xf32>
    %192 = arith.addf %191, %190 : vector<1x128xf32>
    %193 = arith.divf %191, %192 : vector<1x128xf32>
    %194 = vector.extract_strided_slice %185 {offsets = [0, 128], sizes = [1, 128], strides = [1, 1]} : vector<1x384xf32> to vector<1x128xf32>
    %195 = vector.extract_strided_slice %184 {offsets = [0, 128], sizes = [1, 128], strides = [1, 1]} : vector<1x384xf32> to vector<1x128xf32>
    %196 = arith.addf %194, %195 : vector<1x128xf32>
    %197 = arith.negf %196 : vector<1x128xf32>
    %198 = math.exp %197 : vector<1x128xf32>
    %cst_37 = arith.constant 1.000000e+00 : f32
    %199 = vector.broadcast %cst_37 : f32 to vector<1x128xf32>
    %200 = arith.addf %199, %198 : vector<1x128xf32>
    %201 = arith.divf %199, %200 : vector<1x128xf32>
    %202 = vector.extract_strided_slice %185 {offsets = [0, 256], sizes = [1, 128], strides = [1, 1]} : vector<1x384xf32> to vector<1x128xf32>
    %203 = vector.extract_strided_slice %184 {offsets = [0, 256], sizes = [1, 128], strides = [1, 1]} : vector<1x384xf32> to vector<1x128xf32>
    %204 = arith.mulf %193, %203 : vector<1x128xf32>
    %205 = arith.addf %202, %204 : vector<1x128xf32>
    %206 = math.tanh %205 : vector<1x128xf32>
    %cst_38 = arith.constant 1.000000e+00 : f32
    %207 = vector.broadcast %cst_38 : f32 to vector<1x128xf32>
    %208 = arith.subf %207, %201 : vector<1x128xf32>
    %209 = arith.mulf %208, %206 : vector<1x128xf32>
    %210 = arith.mulf %201, %182 : vector<1x128xf32>
    %211 = arith.addf %209, %210 : vector<1x128xf32>
    %cst_39 = arith.constant dense<0.000000e+00> : vector<1x384xf32>
    %212 = tpu.matmul %211, %6, %cst_39 {dimension_numbers = #tpu.dot_dimension_numbers<[1], [0], [0], [1], [0, 0, 1, 1], [], []>} : vector<1x128xf32>, vector<128x384xf32>, vector<1x384xf32> -> vector<1x384xf32>
    %213 = arith.addf %212, %7 : vector<1x384xf32>
    %214 = vector.extract_strided_slice %5 {offsets = [7, 0], sizes = [1, 384], strides = [1, 1]} : vector<8x384xf32> to vector<1x384xf32>
    %215 = vector.extract_strided_slice %214 {offsets = [0, 0], sizes = [1, 128], strides = [1, 1]} : vector<1x384xf32> to vector<1x128xf32>
    %216 = vector.extract_strided_slice %213 {offsets = [0, 0], sizes = [1, 128], strides = [1, 1]} : vector<1x384xf32> to vector<1x128xf32>
    %217 = arith.addf %215, %216 : vector<1x128xf32>
    %218 = arith.negf %217 : vector<1x128xf32>
    %219 = math.exp %218 : vector<1x128xf32>
    %cst_40 = arith.constant 1.000000e+00 : f32
    %220 = vector.broadcast %cst_40 : f32 to vector<1x128xf32>
    %221 = arith.addf %220, %219 : vector<1x128xf32>
    %222 = arith.divf %220, %221 : vector<1x128xf32>
    %223 = vector.extract_strided_slice %214 {offsets = [0, 128], sizes = [1, 128], strides = [1, 1]} : vector<1x384xf32> to vector<1x128xf32>
    %224 = vector.extract_strided_slice %213 {offsets = [0, 128], sizes = [1, 128], strides = [1, 1]} : vector<1x384xf32> to vector<1x128xf32>
    %225 = arith.addf %223, %224 : vector<1x128xf32>
    %226 = arith.negf %225 : vector<1x128xf32>
    %227 = math.exp %226 : vector<1x128xf32>
    %cst_41 = arith.constant 1.000000e+00 : f32
    %228 = vector.broadcast %cst_41 : f32 to vector<1x128xf32>
    %229 = arith.addf %228, %227 : vector<1x128xf32>
    %230 = arith.divf %228, %229 : vector<1x128xf32>
    %231 = vector.extract_strided_slice %214 {offsets = [0, 256], sizes = [1, 128], strides = [1, 1]} : vector<1x384xf32> to vector<1x128xf32>
    %232 = vector.extract_strided_slice %213 {offsets = [0, 256], sizes = [1, 128], strides = [1, 1]} : vector<1x384xf32> to vector<1x128xf32>
    %233 = arith.mulf %222, %232 : vector<1x128xf32>
    %234 = arith.addf %231, %233 : vector<1x128xf32>
    %235 = math.tanh %234 : vector<1x128xf32>
    %cst_42 = arith.constant 1.000000e+00 : f32
    %236 = vector.broadcast %cst_42 : f32 to vector<1x128xf32>
    %237 = arith.subf %236, %230 : vector<1x128xf32>
    %238 = arith.mulf %237, %235 : vector<1x128xf32>
    %239 = arith.mulf %230, %211 : vector<1x128xf32>
    %240 = arith.addf %238, %239 : vector<1x128xf32>
    %241 = tpu.concatenate %37, %66, %95, %124, %153, %182, %211, %240 in 0 : vector<1x128xf32>, vector<1x128xf32>, vector<1x128xf32>, vector<1x128xf32>, vector<1x128xf32>, vector<1x128xf32>, vector<1x128xf32>, vector<1x128xf32> -> vector<8x128xf32>
    %c0_43 = arith.constant 0 : index
    %c0_44 = arith.constant 0 : index
    %242 = vector.load %arg10[%c0_43, %c0_44] : memref<1x128xf32, #tpu.memory_space<vmem>>, vector<1x128xf32>
    tpu.vector_store %arg10[%c0_43, %c0_44], %240 {strides = array<i32>} : memref<1x128xf32, #tpu.memory_space<vmem>>, vector<1x128xf32>,
    %c0_45 = arith.constant 0 : index
    %c0_46 = arith.constant 0 : index
    %243 = vector.load %arg7[%c0_45, %c0_46] : memref<128x256xf32, #tpu.memory_space<vmem>>, vector<128x256xf32>
    %cst_47 = arith.constant dense<0.000000e+00> : vector<8x256xf32>
    %244 = tpu.matmul %241, %243, %cst_47 {dimension_numbers = #tpu.dot_dimension_numbers<[1], [0], [0], [1], [0, 0, 1, 1], [], []>} : vector<8x128xf32>, vector<128x256xf32>, vector<8x256xf32> -> vector<8x256xf32>
    %c0_48 = arith.constant 0 : index
    %c0_49 = arith.constant 0 : index
    %245 = vector.load %arg8[%c0_48, %c0_49] : memref<1x256xf32, #tpu.memory_space<vmem>>, vector<1x256xf32>
    %246 = vector.broadcast %245 : vector<1x256xf32> to vector<8x256xf32>
    %247 = arith.addf %244, %246 : vector<8x256xf32>
    %cst_50 = arith.constant dense<0xFF800000> : vector<8xf32>
    %248 = vector.multi_reduction <maximumf>, %247, %cst_50 [1] : vector<8x256xf32> to vector<8xf32>
    %249 = vector.shape_cast %248 : vector<8xf32> to vector<8x1xf32>
    %250 = vector.broadcast %249 : vector<8x1xf32> to vector<8x256xf32>
    %251 = arith.subf %247, %250 : vector<8x256xf32>
    %252 = math.exp %251 : vector<8x256xf32>
    %cst_51 = arith.constant dense<0.000000e+00> : vector<8xf32>
    %253 = vector.multi_reduction <add>, %252, %cst_51 [1] : vector<8x256xf32> to vector<8xf32>
    %254 = vector.shape_cast %253 : vector<8xf32> to vector<8x1xf32>
    %255 = math.log %254 : vector<8x1xf32>
    %256 = arith.addf %249, %255 : vector<8x1xf32>
    %257 = vector.broadcast %256 : vector<8x1xf32> to vector<8x256xf32>
    %258 = arith.subf %247, %257 : vector<8x256xf32>
    %c0_52 = arith.constant 0 : index
    %c0_53 = arith.constant 0 : index
    %259 = vector.load %arg9[%c0_52, %c0_53] : memref<8x256xf32, #tpu.memory_space<vmem>>, vector<8x256xf32>
    tpu.vector_store %arg9[%c0_52, %c0_53], %258 {strides = array<i32>} : memref<8x256xf32, #tpu.memory_space<vmem>>, vector<8x256xf32>,
    return
  }
  func.func @transform_0(%arg0: i32) -> (i32, i32) {
    %c0_i32 = arith.constant 0 : i32
    %c0_i32_0 = arith.constant 0 : i32
    %c0_i32_1 = arith.constant 0 : i32
    return %c0_i32, %c0_i32_0 : i32, i32
  }
  func.func @transform_1(%arg0: i32) -> (i32, i32) {
    %c0_i32 = arith.constant 0 : i32
    %c0_i32_0 = arith.constant 0 : i32
    %c0_i32_1 = arith.constant 0 : i32
    return %c0_i32, %c0_i32_0 : i32, i32
  }
  func.func @transform_2(%arg0: i32) -> (i32, i32) {
    %c0_i32 = arith.constant 0 : i32
    %c0_i32_0 = arith.constant 0 : i32
    %c0_i32_1 = arith.constant 0 : i32
    return %c0_i32, %c0_i32_0 : i32, i32
  }
  func.func @transform_3(%arg0: i32) -> (i32, i32) {
    %c0_i32 = arith.constant 0 : i32
    %c0_i32_0 = arith.constant 0 : i32
    %c0_i32_1 = arith.constant 0 : i32
    return %c0_i32, %c0_i32_0 : i32, i32
  }
  func.func @transform_4(%arg0: i32) -> (i32, i32) {
    %c0_i32 = arith.constant 0 : i32
    %c0_i32_0 = arith.constant 0 : i32
    %c0_i32_1 = arith.constant 0 : i32
    return %c0_i32, %c0_i32_0 : i32, i32
  }
  func.func @transform_5(%arg0: i32) -> (i32, i32) {
    %c0_i32 = arith.constant 0 : i32
    %c0_i32_0 = arith.constant 0 : i32
    %c0_i32_1 = arith.constant 0 : i32
    return %c0_i32, %c0_i32_0 : i32, i32
  }
  func.func @transform_6(%arg0: i32) -> (i32, i32) {
    %c0_i32 = arith.constant 0 : i32
    %c0_i32_0 = arith.constant 0 : i32
    %c0_i32_1 = arith.constant 0 : i32
    return %c0_i32, %c0_i32_0 : i32, i32
  }
  func.func @transform_7(%arg0: i32) -> (i32, i32) {
    %c0_i32 = arith.constant 0 : i32
    %c0_i32_0 = arith.constant 0 : i32
    %c0_i32_1 = arith.constant 0 : i32
    return %c0_i32, %c0_i32_0 : i32, i32
  }
  func.func @transform_8(%arg0: i32) -> (i32, i32) {
    %c0_i32 = arith.constant 0 : i32
    %c0_i32_0 = arith.constant 0 : i32
    %c0_i32_1 = arith.constant 0 : i32
    return %c0_i32, %c0_i32_0 : i32, i32
  }
  func.func @transform_9(%arg0: i32) -> (i32, i32) {
    %c0_i32 = arith.constant 0 : i32
    %c0_i32_0 = arith.constant 0 : i32
    %c0_i32_1 = arith.constant 0 : i32
    return %c0_i32, %c0_i32_0 : i32, i32
  }
}

</mosaic_0001>

<bundles_post_ra>
// kernel: tpu_custom_call.1
= control target key start
LH: loop header
LB: loop body
LE: loop exit
PB: predicated region body
PF: predicated region fallthrough
CT: control target
= control target key end

     0   :  { %15 = vsyncpa [#allocation3], 0  ;;  %s3657_s0 = inlined_call_operand.hbm [shape: f32[8,128], index: 0, kind: input, shape index: {}]   ;;  %s3658_s1 = inlined_call_operand.vmem [shape: f32[1,128], index: 1, kind: input, shape index: {}]   ;;  %s3659_s2 = inlined_call_operand.hbm [shape: f32[128,384], index: 2, kind: input, shape index: {}]   ;;  %s3660_s3 = inlined_call_operand.hbm [shape: f32[128,384], index: 3, kind: input, shape index: {}]   ;;  %s3661_s4 = inlined_call_operand.vmem [shape: f32[1,384], index: 4, kind: input, shape index: {}]   ;;  %s3662_s5 = inlined_call_operand.vmem [shape: f32[1,384], index: 5, kind: input, shape index: {}]   ;;  %s3663_s6 = inlined_call_operand.hbm [shape: f32[128,256], index: 6, kind: input, shape index: {}]   ;;  %s3664_s7 = inlined_call_operand.vmem [shape: f32[1,256], index: 7, kind: input, shape index: {}]   ;;  %s3665_s8 = inlined_call_operand.hbm [shape: f32[8,256], index: 8, kind: output, shape index: {0}]   ;;  %s3666_s9 = inlined_call_operand.hbm [shape: f32[1,128], index: 9, kind: output, shape index: {1}]  }
   0x1   :  { %16 = vsyncpa [#allocation6], 0 }
   0x2   :  { %17 = vsyncpa [#allocation9], 0 }
   0x3   :  { %18 = vsyncpa [#allocation4], 0 }
   0x4   :  { %19 = vsyncpa [#allocation12], 0  ;;  %s2691_s30 = smov [#allocation5]  }
   0x5   :  { %s37_s10 = sshll.u32 %s2691_s30, 4  ;;  %s38_s10 = int_to_ptr.vmem [resolvable:$true] %s37_s10 }
   0x6   :  { %s2569_s11 = scalar_lea.vmem %s38_s10, 6144  ;;  %p2574_p1 = scmp.lt.s32.totalorder %s38_s10, %s38_s10 }
   0x7   :  { %p2570_p0 = scmp.ne.s32.totalorder %s38_s10, %s2569_s11  ;;  %p2575_p2 = scmp.lt.s32.totalorder %s2569_s11, %s2569_s11 }
   0x9   :  { %p2576_p3 = por %p2575_p2, %p2574_p1 }
   0xb   :  { %p2577_p4 = pnand %p2576_p3, %p2570_p0 }
   0xd   :  { %2580 = shalt.err (!%p2577_p4)
}
   0xe   :  { %s2692_s12 = smov 384   ;;  %s2693_s13 = smov 24  }
   0xf   :  { %43 = dma.hbm_to_vmem [thread:$0]  %s3659_s2, 6144, %s38_s10, [#allocation6], %s2692_s12, %s2692_s12, %s2693_s13  }
  0x10   :  { %s2694_s16 = smov [#allocation2]   ;;  %s2695_s18 = smov [#allocation7]  }
  0x11   :  { %s26_s17 = sshll.u32 %s2694_s16, 4  ;;  %s49_s19 = sshll.u32 %s2695_s18, 4  ;;  %s27_s17 = int_to_ptr.vmem [resolvable:$true] %s26_s17  ;;  %s50_s19 = int_to_ptr.vmem [resolvable:$true] %s49_s19 }
  0x12   :  { %s2589_s20 = scalar_lea.vmem %s27_s17, 128  ;;  %p2594_p6 = scmp.lt.s32.totalorder %s27_s17, %s27_s17 }
  0x13   :  { %p2590_p5 = scmp.ne.s32.totalorder %s27_s17, %s2589_s20  ;;  %p2595_p7 = scmp.lt.s32.totalorder %s2589_s20, %s2589_s20 }
  0x15   :  { %p2596_p8 = por %p2595_p7, %p2594_p6 }
  0x17   :  { %p2597_p9 = pnand %p2596_p8, %p2590_p5 }
  0x19   :  { %2600 = shalt.err (!%p2597_p9)
}
  0x1a   :  { %29 = dma.hbm_to_vmem [thread:$0]  %s3657_s0, 128, %s27_s17, [#allocation3]  }
  0x1b   :  { %s2609_s23 = scalar_lea.vmem %s50_s19, 6144  ;;  %p2614_p11 = scmp.lt.s32.totalorder %s50_s19, %s50_s19 }
  0x1c   :  { %p2610_p10 = scmp.ne.s32.totalorder %s50_s19, %s2609_s23  ;;  %p2615_p12 = scmp.lt.s32.totalorder %s2609_s23, %s2609_s23 }
  0x1e   :  { %p2616_p13 = por %p2615_p12, %p2614_p11 }
  0x20   :  { %p2617_p0 = pnand %p2616_p13, %p2610_p10 }
  0x22   :  { %2620 = shalt.err (!%p2617_p0)
}
  0x23   :  { %55 = dma.hbm_to_vmem [thread:$0]  %s3660_s3, 6144, %s50_s19, [#allocation6], %s2692_s12, %s2692_s12, %s2693_s13  }
  0x24   :  { %s2696_s25 = smov [#allocation8]  }
  0x25   :  { %s65_s26 = sshll.u32 %s2696_s25, 4  ;;  %s66_s26 = int_to_ptr.vmem [resolvable:$true] %s65_s26 }
  0x26   :  { %s2629_s27 = scalar_lea.vmem %s66_s26, 4096  ;;  %p2634_p2 = scmp.lt.s32.totalorder %s66_s26, %s66_s26 }
  0x27   :  { %p2630_p1 = scmp.ne.s32.totalorder %s66_s26, %s2629_s27  ;;  %p2635_p3 = scmp.lt.s32.totalorder %s2629_s27, %s2629_s27 }
  0x29   :  { %p2636_p4 = por %p2635_p3, %p2634_p2 }
  0x2b   :  { %p2637_p5 = pnand %p2636_p4, %p2630_p1 }
  0x2d   :  { %2640 = shalt.err (!%p2637_p5)
}
  0x2e   :  { %s2697_s0 = smov 256   ;;  %s2698_s28 = smov 16  }
  0x2f   :  { %71 = dma.hbm_to_vmem [thread:$0]  %s3663_s6, 4096, %s66_s26, [#allocation9], %s2697_s0, %s2697_s0, %s2698_s28  }
  0x30   :  { %2681 = dma.done.wait [#allocation3], 128  }
  0x31   :  { %2682 = vsyncadd [#allocation3], 4294967168 }
  0x32   :  { %2683 = dma.done.wait [#allocation6], 12288  }
  0x33   :  { %2684 = vsyncadd [#allocation6], 4294955008 }
  0x34   :  { %2685 = dma.done.wait [#allocation9], 4096  }
  0x35   :  { %2686 = vsyncadd [#allocation9], 4294963200  ;;  %v3667_v0 = vmov 0.0   ;;  %vm2700_vm0 = vmmov 0   ;;  %v133_v1 = vld [vmem:[#allocation5 + $0x170] sm:$0xff]  ;;  %v132_v2 = vld [vmem:[#allocation5 + $0x168] sm:$0xff] }
  0x36   :  { %216 = vmatprep.mubr.f32.mxu0 %v3667_v0  ;;  %2100 = vmatprep.subr.mxu1 %v3667_v0  ;;  %v130_v3 = vld [vmem:[#allocation5 + $0x158] sm:$0xff]  ;;  %v129_v4 = vld [vmem:[#allocation5 + $0x150] sm:$0xff]  ;;  %v127_v5 = vld [vmem:[#allocation5 + $0x140] sm:$0xff]  ;;  %vm1751_vm1 = vcmask 1040384   ;;  %vm1753_vm2 = vcmask 1041408   ;;  %vm1755_vm3 = vcmask 1042432  }
  0x37   :  { %2132 = vmatprep.mubr.msk.f32.mxu1 %vm2700_vm0, %v3667_v0  ;;  %152 = vmatprep.subr.mxu0 %v133_v1  ;;  %v126_v6 = vld [vmem:[#allocation5 + $0x138] sm:$0xff]  ;;  %v124_v7 = vld [vmem:[#allocation5 + $0x128] sm:$0xff]  ;;  %v123_v8 = vld [vmem:[#allocation5 + $0x120] sm:$0xff]  ;;  %vm1757_vm4 = vcmask 1043456   ;;  %vm1759_vm5 = vcmask 1044480   ;;  %vm1761_vm6 = vcmask 1045504  }
  0x38   :  { %153 = vmatpush1.msra.mxu0 %v132_v2  ;;  %v121_v9 = vld [vmem:[#allocation5 + $0x110] sm:$0xff]  ;;  %v120_v10 = vld [vmem:[#allocation5 + $0x108] sm:$0xff]  ;;  %v118_v11 = vld [vmem:[#allocation5 + $0xf8] sm:$0xff]  ;;  %vm1763_vm7 = vcmask 1046528  }
  0x39   :  { %154 = vmatprep.subr.mxu0 %v130_v3  ;;  %v117_v12 = vld [vmem:[#allocation5 + $0xf0] sm:$0xff]  ;;  %v115_v13 = vld [vmem:[#allocation5 + $0xe0] sm:$0xff]  ;;  %v114_v14 = vld [vmem:[#allocation5 + $0xd8] sm:$0xff] }
  0x3a   :  { %155 = vmatpush1.msra.mxu0 %v129_v4  ;;  %v134_v15 = vld [vmem:[#allocation5 + $0x178] sm:$0xff]  ;;  %v112_v16 = vld [vmem:[#allocation5 + $0xc8] sm:$0xff]  ;;  %v131_v17 = vld [vmem:[#allocation5 + $0x160] sm:$0xff] }
  0x3b   :  { %156 = vmatprep.subr.mxu0 %v127_v5  ;;  %2101 = vmatpush3.msra.mxu1 %v134_v15  ;;  %v111_v18 = vld [vmem:[#allocation5 + $0xc0] sm:$0xff]  ;;  %v128_v19 = vld [vmem:[#allocation5 + $0x148] sm:$0xff]  ;;  %v109_v20 = vld [vmem:[#allocation5 + $0xb0] sm:$0xff] }
  0x3c   :  { %157 = vmatpush1.msra.mxu0 %v126_v6  ;;  %2102 = vmatprep.subr.mxu1 %v3667_v0  ;;  %v108_v21 = vld [vmem:[#allocation5 + $0xa8] sm:$0xff]  ;;  %v125_v22 = vld [vmem:[#allocation5 + $0x130] sm:$0xff]  ;;  %v106_v23 = vld [vmem:[#allocation5 + $0x98] sm:$0xff] }
  0x3d   :  { %158 = vmatprep.subr.mxu0 %v124_v7  ;;  %2103 = vmatpush3.msra.mxu1 %v131_v17  ;;  %v105_v24 = vld [vmem:[#allocation5 + $0x90] sm:$0xff]  ;;  %v122_v25 = vld [vmem:[#allocation5 + $0x118] sm:$0xff]  ;;  %v103_v26 = vld [vmem:[#allocation5 + $0x80] sm:$0xff] }
  0x3e   :  { %159 = vmatpush1.msra.mxu0 %v123_v8  ;;  %2104 = vmatprep.subr.mxu1 %v3667_v0  ;;  %v102_v27 = vld [vmem:[#allocation5 + $0x78] sm:$0xff]  ;;  %v119_v28 = vld [vmem:[#allocation5 + $0x100] sm:$0xff]  ;;  %v100_v29 = vld [vmem:[#allocation5 + $0x68] sm:$0xff] }
  0x3f   :  { %160 = vmatprep.subr.mxu0 %v121_v9  ;;  %2105 = vmatpush3.msra.mxu1 %v128_v19  ;;  %v99_v30 = vld [vmem:[#allocation5 + $0x60] sm:$0xff]  ;;  %v116_v31 = vld [vmem:[#allocation5 + $0xe8] sm:$0xff]  ;;  %v97_v32 = vld [vmem:[#allocation5 + $0x50] sm:$0xff] }
  0x40   :  { %161 = vmatpush1.msra.mxu0 %v120_v10  ;;  %2106 = vmatprep.subr.mxu1 %v3667_v0  ;;  %v96_v33 = vld [vmem:[#allocation5 + $0x48] sm:$0xff]  ;;  %v113_v34 = vld [vmem:[#allocation5 + $0xd0] sm:$0xff]  ;;  %v94_v35 = vld [vmem:[#allocation5 + $0x38] sm:$0xff] }
  0x41   :  { %162 = vmatprep.subr.mxu0 %v118_v11  ;;  %2107 = vmatpush3.msra.mxu1 %v125_v22  ;;  %v93_v36 = vld [vmem:[#allocation5 + $0x30] sm:$0xff]  ;;  %v110_v37 = vld [vmem:[#allocation5 + $0xb8] sm:$0xff]  ;;  %v91_v38 = vld [vmem:[#allocation5 + $0x20] sm:$0xff] }
  0x42   :  { %163 = vmatpush1.msra.mxu0 %v117_v12  ;;  %2108 = vmatprep.subr.mxu1 %v3667_v0  ;;  %v90_v39 = vld [vmem:[#allocation5 + $0x18] sm:$0xff]  ;;  %v107_v40 = vld [vmem:[#allocation5 + $0xa0] sm:$0xff]  ;;  %v88_v41 = vld [vmem:[#allocation5 + $0x8] sm:$0xff] }
  0x43   :  { %164 = vmatprep.subr.mxu0 %v115_v13  ;;  %2109 = vmatpush3.msra.mxu1 %v122_v25  ;;  %v87_v42 = vld [vmem:[#allocation5] sm:$0xff]  ;;  %v104_v43 = vld [vmem:[#allocation5 + $0x88] sm:$0xff]  ;;  %v86_v44 = vld [vmem:[#allocation2] sm:$0xff] }
  0x44   :  { %165 = vmatpush1.msra.mxu0 %v114_v14  ;;  %2110 = vmatprep.subr.mxu1 %v3667_v0  ;;  %v2778_v45 = vld [vmem:[#allocation7 + $0x170] sm:$0xff]  ;;  %v2780_v46 = vld [vmem:[#allocation7 + $0x168] sm:$0xff]  ;;  %v2783_v47 = vld [vmem:[#allocation7 + $0x158] sm:$0xff] }
  0x45   :  { %166 = vmatprep.subr.mxu0 %v112_v16  ;;  %2111 = vmatpush3.msra.mxu1 %v119_v28  ;;  %3699 = vst [vmem:[#allocation18_spill] sm:$0xff] %v2778_v45  ;;  %v101_v48 = vld [vmem:[#allocation5 + $0x70] sm:$0xff]  ;;  %v2789_v50 = vld [vmem:[#allocation7 + $0x140] sm:$0xff]  ;;  %v98_v51 = vld [vmem:[#allocation5 + $0x58] sm:$0xff] }
  0x46   :  { %167 = vmatpush1.msra.mxu0 %v111_v18  ;;  %2112 = vmatprep.subr.mxu1 %v3667_v0  ;;  %v2786_v49 = vld [vmem:[#allocation7 + $0x150] sm:$0xff]  ;;  %v2793_v52 = vld [vmem:[#allocation7 + $0x138] sm:$0xff]  ;;  %v2796_v53 = vld [vmem:[#allocation7 + $0x128] sm:$0xff] }
  0x47   :  { %168 = vmatprep.subr.mxu0 %v109_v20  ;;  %2113 = vmatpush3.msra.mxu1 %v116_v31  ;;  %v95_v54 = vld [vmem:[#allocation5 + $0x40] sm:$0xff]  ;;  %v2803_v56 = vld [vmem:[#allocation7 + $0x110] sm:$0xff]  ;;  %v92_v57 = vld [vmem:[#allocation5 + $0x28] sm:$0xff] }
  0x48   :  { %169 = vmatpush1.msra.mxu0 %v108_v21  ;;  %2114 = vmatprep.subr.mxu1 %v3667_v0  ;;  %v2800_v55 = vld [vmem:[#allocation7 + $0x120] sm:$0xff]  ;;  %v2807_v58 = vld [vmem:[#allocation7 + $0x108] sm:$0xff]  ;;  %v2810_v59 = vld [vmem:[#allocation7 + $0xf8] sm:$0xff] }
  0x49   :  { %170 = vmatprep.subr.mxu0 %v106_v23  ;;  %2115 = vmatpush3.msra.mxu1 %v113_v34  ;;  %v89_v60 = vld [vmem:[#allocation5 + $0x10] sm:$0xff]  ;;  %v2817_v62 = vld [vmem:[#allocation7 + $0xe0] sm:$0xff]  ;;  %v2821_v63 = vld [vmem:[#allocation7 + $0xd8] sm:$0xff] }
  0x4a   :  { %171 = vmatpush1.msra.mxu0 %v105_v24  ;;  %2116 = vmatprep.subr.mxu1 %v3667_v0  ;;  %v2814_v61 = vld [vmem:[#allocation7 + $0xf0] sm:$0xff]  ;;  %v2824_v1 = vld [vmem:[#allocation7 + $0xc8] sm:$0xff]  ;;  %v2827_v2 = vld [vmem:[#allocation7 + $0x178] sm:$0xff] }
  0x4b   :  { %172 = vmatprep.subr.mxu0 %v103_v26  ;;  %2117 = vmatpush3.msra.mxu1 %v110_v37  ;;  %v2830_v3 = vld [vmem:[#allocation7 + $0xc0] sm:$0xff]  ;;  %v2834_v4 = vld [vmem:[#allocation7 + $0xb0] sm:$0xff]  ;;  %v2839_v6 = vld [vmem:[#allocation7 + $0xa8] sm:$0xff] }
  0x4c   :  { %173 = vmatpush1.msra.mxu0 %v102_v27  ;;  %2118 = vmatprep.subr.mxu1 %v3667_v0  ;;  %v2836_v5 = vld [vmem:[#allocation7 + $0x160] sm:$0xff]  ;;  %v2843_v7 = vld [vmem:[#allocation7 + $0x98] sm:$0xff]  ;;  %v2846_v8 = vld [vmem:[#allocation7 + $0x148] sm:$0xff] }
  0x4d   :  { %174 = vmatprep.subr.mxu0 %v100_v29  ;;  %2119 = vmatpush3.msra.mxu1 %v107_v40  ;;  %v2849_v9 = vld [vmem:[#allocation7 + $0x90] sm:$0xff]  ;;  %v2853_v10 = vld [vmem:[#allocation7 + $0x80] sm:$0xff]  ;;  %v2859_v12 = vld [vmem:[#allocation7 + $0x78] sm:$0xff] }
  0x4e   :  { %175 = vmatpush1.msra.mxu0 %v99_v30  ;;  %2120 = vmatprep.subr.mxu1 %v3667_v0  ;;  %v2856_v11 = vld [vmem:[#allocation7 + $0x130] sm:$0xff]  ;;  %v2863_v13 = vld [vmem:[#allocation7 + $0x68] sm:$0xff]  ;;  %v2866_v14 = vld [vmem:[#allocation7 + $0x118] sm:$0xff] }
  0x4f   :  { %176 = vmatprep.subr.mxu0 %v97_v32  ;;  %2121 = vmatpush3.msra.mxu1 %v104_v43  ;;  %v2869_v15 = vld [vmem:[#allocation7 + $0x60] sm:$0xff]  ;;  %v2873_v16 = vld [vmem:[#allocation7 + $0x50] sm:$0xff]  ;;  %v2879_v18 = vld [vmem:[#allocation7 + $0x48] sm:$0xff] }
  0x50   :  { %177 = vmatpush1.msra.mxu0 %v96_v33  ;;  %2122 = vmatprep.subr.mxu1 %v3667_v0  ;;  %v2876_v17 = vld [vmem:[#allocation7 + $0x100] sm:$0xff]  ;;  %v2883_v19 = vld [vmem:[#allocation7 + $0x38] sm:$0xff]  ;;  %v2886_v20 = vld [vmem:[#allocation7 + $0xe8] sm:$0xff] }
  0x51   :  { %178 = vmatprep.subr.mxu0 %v94_v35  ;;  %2123 = vmatpush3.msra.mxu1 %v101_v48  ;;  %v2889_v21 = vld [vmem:[#allocation7 + $0x30] sm:$0xff]  ;;  %v2893_v22 = vld [vmem:[#allocation7 + $0x20] sm:$0xff]  ;;  %v2899_v24 = vld [vmem:[#allocation7 + $0x18] sm:$0xff] }
  0x52   :  { %179 = vmatpush1.msra.mxu0 %v93_v36  ;;  %2124 = vmatprep.subr.mxu1 %v3667_v0  ;;  %3700 = vst [vmem:[#allocation19_spill] sm:$0xff] %v2889_v21  ;;  %3701 = vst [vmem:[#allocation20_spill] sm:$0xff] %v2893_v22  ;;  %v2896_v23 = vld [vmem:[#allocation7 + $0xd0] sm:$0xff]  ;;  %v2903_v25 = vld [vmem:[#allocation7 + $0x8] sm:$0xff] }
  0x53   :  { %180 = vmatprep.subr.mxu0 %v91_v38  ;;  %2125 = vmatpush3.msra.mxu1 %v98_v51  ;;  %3702 = vst [vmem:[#allocation21_spill] sm:$0xff] %v2899_v24  ;;  %3703 = vst [vmem:[#allocation22_spill] sm:$0xff] %v2903_v25  ;;  %v2906_v26 = vld [vmem:[#allocation7 + $0xb8] sm:$0xff]  ;;  %v2909_v27 = vld [vmem:[#allocation7] sm:$0xff]  ;;  %v137_v38 = vlaneseq }
  0x54   :  { %181 = vmatpush1.msra.mxu0 %v90_v39  ;;  %2126 = vmatprep.subr.mxu1 %v3667_v0  ;;  %3704 = vst [vmem:[#allocation23_spill] sm:$0xff] %v2909_v27  ;;  %v2916_v28 = vld [vmem:[%s3658_s1] sm:$0x1]  ;;  %v2919_v29 = vld [vmem:[#allocation7 + $0xa0] sm:$0xff]  ;;  %v2925_v30 = vld [vmem:[#allocation7 + $0x88] sm:$0xff] }
  0x55   :  { %182 = vmatprep.subr.mxu0 %v88_v41  ;;  %2127 = vmatpush3.msra.mxu1 %v95_v54  ;;  %v2930_v31 = vld [vmem:[#allocation7 + $0x70] sm:$0xff]  ;;  %v2937_v32 = vld [vmem:[#allocation7 + $0x58] sm:$0xff]  ;;  %v2943_v33 = vld [vmem:[#allocation7 + $0x40] sm:$0xff]  ;;  %v138_v39 = vshrl.u32 %v137_v38, 7 }
  0x56   :  { %183 = vmatpush1.msra.mxu0 %v87_v42  ;;  %2128 = vmatprep.subr.mxu1 %v3667_v0  ;;  %3705 = vst [vmem:[#allocation24_spill] sm:$0xff] %v2943_v33  ;;  %v2949_v34 = vld [vmem:[#allocation7 + $0x28] sm:$0xff]  ;;  %v2955_v35 = vld [vmem:[#allocation7 + $0x10] sm:$0xff]  ;;  %v135_v41 = vld [vmem:[%s3661_s4] sm:$0x7] }
  0x57   :  { %217 = vmatmul.mubr.f32.vlgmr.msra.gmra.mxu0 %v86_v44  ;;  %359 = vmatprep.subr.mxu0 %v2778_v45  ;;  %3706 = vst [vmem:[#allocation25_spill] sm:$0xff] %v2949_v34  ;;  %3707 = vst [vmem:[#allocation26_spill] sm:$0xff] %v2955_v35  ;;  %v3023_v40 = vsub.s32 0, %v138_v39  ;;  %v341_v43 = vld [vmem:[%s3662_s5] sm:$0x7]  ;;  %v3035_v54 = vsub.s32 1, %v138_v39 }
  0x58   :  { %360 = vmatpush1.msra.mxu0 %v2780_v46  ;;  %2129 = vmatpush3.msra.mxu1 %v92_v57 }
  0x59   :  { %361 = vmatprep.subr.mxu0 %v2783_v47  ;;  %2130 = vmatprep.subr.mxu1 %v3667_v0  ;;  %3708 = vst [vmem:[#allocation27_spill] sm:$0xff] %v3023_v40  ;;  %v3033_v48 = vrot.slane %v341_v43, %v3023_v40  ;;  %3710 = vst [vmem:[#allocation29_spill] sm:$0xff] %v3035_v54 }
  0x5a   :  { %362 = vmatpush1.msra.mxu0 %v2786_v49  ;;  %2131 = vmatpush3.msra.mxu1 %v89_v60 }
  0x5b   :  { %363 = vmatprep.subr.mxu0 %v2789_v50  ;;  %423 = vmatprep.mubr.f32.mxu0 %v3667_v0  ;;  %3709 = vst [vmem:[#allocation28_spill] sm:$0xff] %v3033_v48 }
  0x5c   :  { %364 = vmatpush1.msra.mxu0 %v2793_v52  ;;  %2135 = vmatprep.subr.mxu1 %v3667_v0 }
  0x5d   :  { %365 = vmatprep.subr.mxu0 %v2796_v53  ;;  %2133 = vmatmul.mubr.f32.vlgmr.msra.gmra.mxu1 %v86_v44  ;;  %v140_v44 = vrot.slane %v135_v41, %v3023_v40 }
  0x5e   :  { %366 = vmatpush1.msra.mxu0 %v2800_v55  ;;  %2136 = vmatpush3.msra.mxu1 %v2827_v2 }
  0x5f   :  { %367 = vmatprep.subr.mxu0 %v2803_v56  ;;  %2137 = vmatprep.subr.mxu1 %v3667_v0 }
  0x60   :  { %368 = vmatpush1.msra.mxu0 %v2807_v58  ;;  %2138 = vmatpush3.msra.mxu1 %v2836_v5 }
  0x61   :  { %369 = vmatprep.subr.mxu0 %v2810_v59  ;;  %2139 = vmatprep.subr.mxu1 %v3667_v0 }
  0x62   :  { %370 = vmatpush1.msra.mxu0 %v2814_v61  ;;  %2140 = vmatpush3.msra.mxu1 %v2846_v8 }
  0x63   :  { %371 = vmatprep.subr.mxu0 %v2817_v62  ;;  %2141 = vmatprep.subr.mxu1 %v3667_v0 }
  0x64   :  { %372 = vmatpush1.msra.mxu0 %v2821_v63  ;;  %2142 = vmatpush3.msra.mxu1 %v2856_v11 }
  0x65   :  { %373 = vmatprep.subr.mxu0 %v2824_v1  ;;  %2143 = vmatprep.subr.mxu1 %v3667_v0 }
  0x66   :  { %374 = vmatpush1.msra.mxu0 %v2830_v3  ;;  %2144 = vmatpush3.msra.mxu1 %v2866_v14 }
  0x67   :  { %375 = vmatprep.subr.mxu0 %v2834_v4  ;;  %2145 = vmatprep.subr.mxu1 %v3667_v0 }
  0x68   :  { %376 = vmatpush1.msra.mxu0 %v2839_v6  ;;  %2146 = vmatpush3.msra.mxu1 %v2876_v17 }
  0x69   :  { %377 = vmatprep.subr.mxu0 %v2843_v7  ;;  %2147 = vmatprep.subr.mxu1 %v3667_v0 }
  0x6a   :  { %378 = vmatpush1.msra.mxu0 %v2849_v9  ;;  %2148 = vmatpush3.msra.mxu1 %v2886_v20 }
  0x6b   :  { %379 = vmatprep.subr.mxu0 %v2853_v10  ;;  %2149 = vmatprep.subr.mxu1 %v3667_v0 }
  0x6c   :  { %380 = vmatpush1.msra.mxu0 %v2859_v12  ;;  %2150 = vmatpush3.msra.mxu1 %v2896_v23 }
  0x6d   :  { %381 = vmatprep.subr.mxu0 %v2863_v13  ;;  %2151 = vmatprep.subr.mxu1 %v3667_v0 }
  0x6e   :  { %382 = vmatpush1.msra.mxu0 %v2869_v15  ;;  %2152 = vmatpush3.msra.mxu1 %v2906_v26 }
  0x6f   :  { %383 = vmatprep.subr.mxu0 %v2873_v16  ;;  %2153 = vmatprep.subr.mxu1 %v3667_v0 }
  0x70   :  { %384 = vmatpush1.msra.mxu0 %v2879_v18  ;;  %2154 = vmatpush3.msra.mxu1 %v2919_v29 }
  0x71   :  { %385 = vmatprep.subr.mxu0 %v2883_v19  ;;  %2155 = vmatprep.subr.mxu1 %v3667_v0 }
  0x72   :  { %386 = vmatpush1.msra.mxu0 %v2889_v21  ;;  %2167 = vmatprep.mubr.msk.f32.mxu1 %vm2700_vm0, %v3667_v0 }
  0x73   :  { %387 = vmatprep.subr.mxu0 %v2893_v22  ;;  %2156 = vmatpush3.msra.mxu1 %v2925_v30 }
  0x74   :  { %388 = vmatpush1.msra.mxu0 %v2899_v24  ;;  %2157 = vmatprep.subr.mxu1 %v3667_v0 }
  0x75   :  { %389 = vmatprep.subr.mxu0 %v2903_v25  ;;  %2158 = vmatpush3.msra.mxu1 %v2930_v31 }
  0x76   :  { %390 = vmatpush1.msra.mxu0 %v2909_v27  ;;  %2159 = vmatprep.subr.mxu1 %v3667_v0 }
  0x77   :  { %424 = vmatmul.mubr.f32.vlgmr.msra.gmra.mxu0 %v2916_v28  ;;  %521 = vmatprep.subr.mxu0 %v2778_v45 }
  0x78   :  { %522 = vmatpush1.msra.mxu0 %v2780_v46  ;;  %2160 = vmatpush3.msra.mxu1 %v2937_v32 }
  0x79   :  { %523 = vmatprep.subr.mxu0 %v2783_v47  ;;  %2161 = vmatprep.subr.mxu1 %v3667_v0 }
  0x7a   :  { %524 = vmatpush1.msra.mxu0 %v2786_v49  ;;  %2162 = vmatpush3.msra.mxu1 %v2943_v33 }
  0x7b   :  { %525 = vmatprep.subr.mxu0 %v2789_v50  ;;  %2163 = vmatprep.subr.mxu1 %v3667_v0 }
  0x7c   :  { %526 = vmatpush1.msra.mxu0 %v2793_v52  ;;  %2164 = vmatpush3.msra.mxu1 %v2949_v34 }
  0x7d   :  { %527 = vmatprep.subr.mxu0 %v2796_v53  ;;  %2165 = vmatprep.subr.mxu1 %v3667_v0 }
  0x7e   :  { %528 = vmatpush1.msra.mxu0 %v2800_v55  ;;  %2166 = vmatpush3.msra.mxu1 %v2955_v35 }
  0x7f   :  { %529 = vmatprep.subr.mxu0 %v2803_v56  ;;  %2168 = vmatmul.mubr.f32.vlgmr.msra.gmra.mxu1 %v2916_v28 }
  0x80   :  { %530 = vmatpush1.msra.mxu0 %v2807_v58  ;;  %2170 = vmatprep.subr.mxu1 %v3667_v0 }
  0x81   :  { %531 = vmatprep.subr.mxu0 %v2810_v59  ;;  %2171 = vmatpush3.msra.mxu1 %v2827_v2 }
  0x82   :  { %532 = vmatpush1.msra.mxu0 %v2814_v61  ;;  %2172 = vmatprep.subr.mxu1 %v3667_v0 }
  0x83   :  { %533 = vmatprep.subr.mxu0 %v2817_v62  ;;  %2173 = vmatpush3.msra.mxu1 %v2836_v5 }
  0x84   :  { %534 = vmatpush1.msra.mxu0 %v2821_v63  ;;  %2174 = vmatprep.subr.mxu1 %v3667_v0 }
  0x85   :  { %535 = vmatprep.subr.mxu0 %v2824_v1  ;;  %2175 = vmatpush3.msra.mxu1 %v2846_v8 }
  0x86   :  { %536 = vmatpush1.msra.mxu0 %v2830_v3  ;;  %2176 = vmatprep.subr.mxu1 %v3667_v0 }
  0x87   :  { %537 = vmatprep.subr.mxu0 %v2834_v4  ;;  %2177 = vmatpush3.msra.mxu1 %v2856_v11 }
  0x88   :  { %538 = vmatpush1.msra.mxu0 %v2839_v6  ;;  %2178 = vmatprep.subr.mxu1 %v3667_v0 }
  0x89   :  { %539 = vmatprep.subr.mxu0 %v2843_v7  ;;  %2179 = vmatpush3.msra.mxu1 %v2866_v14 }
  0x8a   :  { %540 = vmatpush1.msra.mxu0 %v2849_v9  ;;  %2180 = vmatprep.subr.mxu1 %v3667_v0 }
  0x8b   :  { %541 = vmatprep.subr.mxu0 %v2853_v10  ;;  %2181 = vmatpush3.msra.mxu1 %v2876_v17 }
  0x8c   :  { %542 = vmatpush1.msra.mxu0 %v2859_v12  ;;  %2182 = vmatprep.subr.mxu1 %v3667_v0 }
  0x8d   :  { %543 = vmatprep.subr.mxu0 %v2863_v13  ;;  %2183 = vmatpush3.msra.mxu1 %v2886_v20 }
  0x8e   :  { %544 = vmatpush1.msra.mxu0 %v2869_v15  ;;  %2184 = vmatprep.subr.mxu1 %v3667_v0 }
  0x8f   :  { %545 = vmatprep.subr.mxu0 %v2873_v16  ;;  %2185 = vmatpush3.msra.mxu1 %v2896_v23 }
  0x90   :  { %546 = vmatpush1.msra.mxu0 %v2879_v18  ;;  %2186 = vmatprep.subr.mxu1 %v3667_v0 }
  0x91   :  { %547 = vmatprep.subr.mxu0 %v2883_v19  ;;  %2187 = vmatpush3.msra.mxu1 %v2906_v26 }
  0x92   :  { %548 = vmatpush1.msra.mxu0 %v2889_v21  ;;  %2188 = vmatprep.subr.mxu1 %v3667_v0 }
  0x93   :  { %549 = vmatprep.subr.mxu0 %v2893_v22  ;;  %2189 = vmatpush3.msra.mxu1 %v2919_v29 }
  0x94   :  { %550 = vmatpush1.msra.mxu0 %v2899_v24  ;;  %2190 = vmatprep.subr.mxu1 %v3667_v0 }
  0x95   :  { %551 = vmatprep.subr.mxu0 %v2903_v25  ;;  %2191 = vmatpush3.msra.mxu1 %v2925_v30 }
  0x96   :  { %552 = vmatpush1.msra.mxu0 %v2909_v27  ;;  %2192 = vmatprep.subr.mxu1 %v3667_v0 }
  0x97   :  { %585 = vmatprep.mubr.f32.mxu0 %v3667_v0  ;;  %2193 = vmatpush3.msra.mxu1 %v2930_v31 }
  0x98   :  { %2202 = vmatprep.mubr.msk.f32.mxu1 %vm2700_vm0, %v3667_v0  ;;  %2194 = vmatprep.subr.mxu1 %v3667_v0 }
  0x99   :  { %698 = vmatprep.subr.mxu0 %v2778_v45  ;;  %2195 = vmatpush3.msra.mxu1 %v2937_v32  ;;  %v144_v45 = vrot.slane %v135_v41, %v3035_v54 }
  0x9a   :  { %2196 = vmatprep.subr.mxu1 %v3667_v0 }
  0x9b   :  { %2197 = vmatpush3.msra.mxu1 %v2943_v33 }
  0x9c   :  { %2198 = vmatprep.subr.mxu1 %v3667_v0 }
  0x9d   :  { %2199 = vmatpush3.msra.mxu1 %v2949_v34 }
  0x9e   :  { %2200 = vmatprep.subr.mxu1 %v3667_v0 }
  0x9f   :  { %2201 = vmatpush3.msra.mxu1 %v2955_v35 }
  0xa0   :  { %2205 = vmatprep.subr.mxu1 %v3667_v0 }
 0x117   :  { %v218_v42 = vpop.f32.mrf.mxu0 }
 0x118   :  { %v3037_v60 = vadd.f32 %v218_v42, %v140_v44 }
 0x119   :  { %v220_v51 = vpop.f32.mrf.mxu0 }
 0x11a   :  { %v3046_v25 = vadd.f32 %v220_v51, %v144_v45 }
 0x11d   :  { %v289_v36 = vpop.f32.mrf.mxu1 }
 0x11f   :  { %v2134_v37 = vpop.f32.mrf.mxu1 }
 0x120   :  { %v3040_v37 = vrot.slane %v341_v43, %v3035_v54 }
 0x137   :  { %v425_v57 = vpop.f32.mrf.mxu0 }
 0x138   :  { %v426_v38 = vadd.f32 %v425_v57, %v3033_v48  ;;  %v147_v57 = vsub.s32 2, %v138_v39 }
 0x139   :  { %v427_v0 = vpop.f32.mrf.mxu0 }
 0x13a   :  { %v500_v35 = vadd.f32 %v426_v38, %v3037_v60  ;;  %v428_v40 = vadd.f32 %v427_v0, %v3040_v37  ;;  %v3049_v48 = vrot.slane %v341_v43, %v147_v57  ;;  %v148_v38 = vrot.slane %v135_v41, %v147_v57  ;;  %v3713_v41 = vld [vmem:[#allocation20_spill] sm:$0xff]  ;;  %v3717_v57 = vld [vmem:[#allocation23_spill] sm:$0xff] }
 0x13c   :  { %v1931_v27 = vmul.f32 -1.442695, %v500_v35  ;;  %v507_v34 = vadd.f32 %v428_v40, %v3046_v25  ;;  %v3052_v51 = vadd.f32 %v289_v36, %v148_v38  ;;  %v3711_v36 = vmov 0.0   ;;  %v3718_v38 = vld [vmem:[#allocation26_spill] sm:$0xff] }
 0x13e   :  { %2427 = vpow2.f32 %v1931_v27  ;;  %v1932_v42 = vmul.f32 -1.442695, %v507_v34 }
 0x13f   :  { %v496_v44 = vpop.f32.mrf.mxu1 }
 0x140   :  { %2429 = vpow2.f32 %v1932_v42  ;;  %v497_v0 = vadd.f32 %v496_v44, %v3049_v48  ;;  %v3715_v42 = vld [vmem:[#allocation25_spill] sm:$0xff]  ;;  %v3716_v44 = vld [vmem:[#allocation22_spill] sm:$0xff] }
 0x141   :  { %v2169_v24 = vpop.f32.mrf.mxu1 }
 0x14b   :  { %v2428_v22 = vpop.eup %2427 }
 0x14c   :  { %v504_v33 = vadd.f32 1.0, %v2428_v22 }
 0x14d   :  { %v2430_v54 = vpop.eup %2429 }
 0x14e   :  { %2431 = vrcp.f32 %v504_v33  ;;  %v511_v35 = vadd.f32 1.0, %v2430_v54  ;;  %v3714_v54 = vld [vmem:[#allocation21_spill] sm:$0xff] }
 0x150   :  { %2433 = vrcp.f32 %v511_v35  ;;  %v3719_v35 = vld [vmem:[#allocation18_spill] sm:$0xff] }
 0x15b   :  { %v2432_v45 = vpop.eup %2431 }
 0x15c   :  { %v514_v27 = vmul.f32 %v2432_v45, %v497_v0 }
 0x15d   :  { %v2434_v24 = vpop.eup %2433 }
 0x15e   :  { %v515_v34 = vadd.f32 %v514_v27, %v3052_v51  ;;  %v517_v40 = vsub.f32 1.0, %v2434_v24  ;;  %v519_v39 = vmul.f32 %v2434_v24, %v2916_v28  ;;  %v3712_v28 = vld [vmem:[#allocation24_spill] sm:$0xff] }
 0x15f   :  { %v3720_v27 = vld [vmem:[#allocation28_spill] sm:$0xff] }
 0x160   :  { %2435 = vtanh.f32 %v515_v34 }
 0x16d   :  { %v2436_v22 = vpop.eup %2435 }
 0x16e   :  { %v518_v33 = vmul.f32 %v2436_v22, %v517_v40 }
 0x170   :  { %v3056_v43 = vadd.f32 %v519_v39, %v518_v33 }
 0x172   :  { %586 = vmatmul.mubr.f32.vlgmr.msra.gmra.mxu0 %v3056_v43  ;;  %2203 = vmatmul.mubr.f32.vlgmr.msra.gmra.mxu1 %v3056_v43 }
 0x173   :  { %699 = vmatpush1.msra.mxu0 %v2780_v46  ;;  %2206 = vmatpush3.msra.mxu1 %v2827_v2 }
 0x174   :  { %700 = vmatprep.subr.mxu0 %v2783_v47  ;;  %2207 = vmatprep.subr.mxu1 %v3711_v36 }
 0x175   :  { %701 = vmatpush1.msra.mxu0 %v2786_v49  ;;  %2208 = vmatpush3.msra.mxu1 %v2836_v5 }
 0x176   :  { %702 = vmatprep.subr.mxu0 %v2789_v50  ;;  %2209 = vmatprep.subr.mxu1 %v3711_v36 }
 0x177   :  { %703 = vmatpush1.msra.mxu0 %v2793_v52  ;;  %2210 = vmatpush3.msra.mxu1 %v2846_v8 }
 0x178   :  { %704 = vmatprep.subr.mxu0 %v2796_v53  ;;  %2211 = vmatprep.subr.mxu1 %v3711_v36 }
 0x179   :  { %705 = vmatpush1.msra.mxu0 %v2800_v55  ;;  %2212 = vmatpush3.msra.mxu1 %v2856_v11 }
 0x17a   :  { %706 = vmatprep.subr.mxu0 %v2803_v56  ;;  %2213 = vmatprep.subr.mxu1 %v3711_v36 }
 0x17b   :  { %707 = vmatpush1.msra.mxu0 %v2807_v58  ;;  %2214 = vmatpush3.msra.mxu1 %v2866_v14 }
 0x17c   :  { %708 = vmatprep.subr.mxu0 %v2810_v59  ;;  %2215 = vmatprep.subr.mxu1 %v3711_v36 }
 0x17d   :  { %709 = vmatpush1.msra.mxu0 %v2814_v61  ;;  %2216 = vmatpush3.msra.mxu1 %v2876_v17 }
 0x17e   :  { %710 = vmatprep.subr.mxu0 %v2817_v62  ;;  %2217 = vmatprep.subr.mxu1 %v3711_v36 }
 0x17f   :  { %711 = vmatpush1.msra.mxu0 %v2821_v63  ;;  %2218 = vmatpush3.msra.mxu1 %v2886_v20 }
 0x180   :  { %712 = vmatprep.subr.mxu0 %v2824_v1  ;;  %2219 = vmatprep.subr.mxu1 %v3711_v36 }
 0x181   :  { %713 = vmatpush1.msra.mxu0 %v2830_v3  ;;  %2220 = vmatpush3.msra.mxu1 %v2896_v23 }
 0x182   :  { %714 = vmatprep.subr.mxu0 %v2834_v4  ;;  %2221 = vmatprep.subr.mxu1 %v3711_v36 }
 0x183   :  { %715 = vmatpush1.msra.mxu0 %v2839_v6  ;;  %2222 = vmatpush3.msra.mxu1 %v2906_v26 }
 0x184   :  { %716 = vmatprep.subr.mxu0 %v2843_v7  ;;  %2223 = vmatprep.subr.mxu1 %v3711_v36 }
 0x185   :  { %717 = vmatpush1.msra.mxu0 %v2849_v9  ;;  %2224 = vmatpush3.msra.mxu1 %v2919_v29 }
 0x186   :  { %718 = vmatprep.subr.mxu0 %v2853_v10  ;;  %2225 = vmatprep.subr.mxu1 %v3711_v36 }
 0x187   :  { %719 = vmatpush1.msra.mxu0 %v2859_v12  ;;  %2226 = vmatpush3.msra.mxu1 %v2925_v30 }
 0x188   :  { %720 = vmatprep.subr.mxu0 %v2863_v13  ;;  %2227 = vmatprep.subr.mxu1 %v3711_v36 }
 0x189   :  { %721 = vmatpush1.msra.mxu0 %v2869_v15  ;;  %2228 = vmatpush3.msra.mxu1 %v2930_v31 }
 0x18a   :  { %722 = vmatprep.subr.mxu0 %v2873_v16  ;;  %2229 = vmatprep.subr.mxu1 %v3711_v36 }
 0x18b   :  { %723 = vmatpush1.msra.mxu0 %v2879_v18  ;;  %2230 = vmatpush3.msra.mxu1 %v2937_v32 }
 0x18c   :  { %724 = vmatprep.subr.mxu0 %v2883_v19  ;;  %2231 = vmatprep.subr.mxu1 %v3711_v36 }
 0x18d   :  { %725 = vmatpush1.msra.mxu0 %v2889_v21  ;;  %2232 = vmatpush3.msra.mxu1 %v3712_v28 }
 0x18e   :  { %726 = vmatprep.subr.mxu0 %v3713_v41  ;;  %2233 = vmatprep.subr.mxu1 %v3711_v36 }
 0x18f   :  { %727 = vmatpush1.msra.mxu0 %v3714_v54  ;;  %2234 = vmatpush3.msra.mxu1 %v3715_v42 }
 0x190   :  { %728 = vmatprep.subr.mxu0 %v3716_v44  ;;  %2235 = vmatprep.subr.mxu1 %v3711_v36 }
 0x191   :  { %729 = vmatpush1.msra.mxu0 %v3717_v57  ;;  %762 = vmatprep.mubr.f32.mxu0 %v3711_v36 }
 0x192   :  { %2236 = vmatpush3.msra.mxu1 %v3718_v38  ;;  %2237 = vmatprep.mubr.msk.f32.mxu1 %vm2700_vm0, %v3711_v36 }
 0x193   :  { %874 = vmatprep.subr.mxu0 %v3719_v35  ;;  %2240 = vmatprep.subr.mxu1 %v3711_v36 }
 0x232   :  { %v587_v0 = vpop.f32.mrf.mxu0  ;;  %v658_v45 = vpop.f32.mrf.mxu1 }
 0x233   :  { %v588_v34 = vadd.f32 %v587_v0, %v3720_v27  ;;  %v659_v0 = vadd.f32 %v658_v45, %v3049_v48  ;;  %v3723_v45 = vld [vmem:[#allocation21_spill] sm:$0xff] }
 0x234   :  { %v589_v24 = vpop.f32.mrf.mxu0  ;;  %v2204_v40 = vpop.f32.mrf.mxu1 }
 0x235   :  { %v663_v22 = vrot.slane %v588_v34, 7  ;;  %v590_v33 = vadd.f32 %v589_v24, %v3040_v37  ;;  %v683_v40 = vrot.slane %v659_v0, 7  ;;  %v3726_v0 = vld [vmem:[#allocation23_spill] sm:$0xff] }
 0x237   :  { %v665_v39 = vadd.f32 %v663_v22, %v3037_v60  ;;  %v673_v38 = vrot.slane %v590_v33, 7 }
 0x239   :  { %v1933_v57 = vmul.f32 -1.442695, %v665_v39  ;;  %v675_v44 = vadd.f32 %v673_v38, %v3046_v25  ;;  %v3725_v39 = vld [vmem:[#allocation22_spill] sm:$0xff] }
 0x23b   :  { %2437 = vpow2.f32 %v1933_v57  ;;  %v1934_v42 = vmul.f32 -1.442695, %v675_v44  ;;  %v691_v57 = vrot.slane %v3056_v43, 7 }
 0x23d   :  { %2439 = vpow2.f32 %v1934_v42 }
 0x248   :  { %v2438_v35 = vpop.eup %2437 }
 0x249   :  { %v669_v54 = vadd.f32 1.0, %v2438_v35 }
 0x24a   :  { %v2440_v41 = vpop.eup %2439 }
 0x24b   :  { %2441 = vrcp.f32 %v669_v54  ;;  %v679_v27 = vadd.f32 1.0, %v2440_v41  ;;  %v3722_v41 = vld [vmem:[#allocation20_spill] sm:$0xff] }
 0x24d   :  { %2443 = vrcp.f32 %v679_v27  ;;  %v3724_v27 = vld [vmem:[#allocation25_spill] sm:$0xff] }
 0x258   :  { %v2442_v34 = vpop.eup %2441 }
 0x259   :  { %v685_v28 = vmul.f32 %v2442_v34, %v683_v40  ;;  %v3727_v40 = vld [vmem:[#allocation26_spill] sm:$0xff] }
 0x25a   :  { %v2444_v22 = vpop.eup %2443  ;;  %v3728_v34 = vld [vmem:[#allocation18_spill] sm:$0xff] }
 0x25b   :  { %v686_v24 = vadd.f32 %v685_v28, %v3052_v51  ;;  %v688_v38 = vsub.f32 1.0, %v2444_v22  ;;  %v693_v33 = vmul.f32 %v2444_v22, %v691_v57  ;;  %v3721_v28 = vld [vmem:[#allocation24_spill] sm:$0xff] }
 0x25c   :  { %v3729_v57 = vld [vmem:[#allocation28_spill] sm:$0xff] }
 0x25d   :  { %2445 = vtanh.f32 %v686_v24 }
 0x26a   :  { %v2446_v44 = vpop.eup %2445 }
 0x26b   :  { %v689_v42 = vmul.f32 %v2446_v44, %v688_v38 }
 0x26d   :  { %v3134_v35 = vadd.f32 %v693_v33, %v689_v42 }
 0x26f   :  { %v696_v54 = vrot.slane %v3134_v35, 1 }
 0x271   :  { %763 = vmatmul.mubr.f32.vlgmr.msra.gmra.mxu0 %v696_v54  ;;  %2238 = vmatmul.mubr.f32.vlgmr.msra.gmra.mxu1 %v696_v54 }
 0x272   :  { %875 = vmatpush1.msra.mxu0 %v2780_v46  ;;  %2241 = vmatpush3.msra.mxu1 %v2827_v2 }
 0x273   :  { %876 = vmatprep.subr.mxu0 %v2783_v47  ;;  %2242 = vmatprep.subr.mxu1 %v3711_v36 }
 0x274   :  { %877 = vmatpush1.msra.mxu0 %v2786_v49  ;;  %2243 = vmatpush3.msra.mxu1 %v2836_v5 }
 0x275   :  { %878 = vmatprep.subr.mxu0 %v2789_v50  ;;  %2244 = vmatprep.subr.mxu1 %v3711_v36 }
 0x276   :  { %879 = vmatpush1.msra.mxu0 %v2793_v52  ;;  %2245 = vmatpush3.msra.mxu1 %v2846_v8 }
 0x277   :  { %880 = vmatprep.subr.mxu0 %v2796_v53  ;;  %2246 = vmatprep.subr.mxu1 %v3711_v36 }
 0x278   :  { %881 = vmatpush1.msra.mxu0 %v2800_v55  ;;  %2247 = vmatpush3.msra.mxu1 %v2856_v11 }
 0x279   :  { %882 = vmatprep.subr.mxu0 %v2803_v56  ;;  %2248 = vmatprep.subr.mxu1 %v3711_v36 }
 0x27a   :  { %883 = vmatpush1.msra.mxu0 %v2807_v58  ;;  %2249 = vmatpush3.msra.mxu1 %v2866_v14 }
 0x27b   :  { %884 = vmatprep.subr.mxu0 %v2810_v59  ;;  %2250 = vmatprep.subr.mxu1 %v3711_v36 }
 0x27c   :  { %885 = vmatpush1.msra.mxu0 %v2814_v61  ;;  %2251 = vmatpush3.msra.mxu1 %v2876_v17 }
 0x27d   :  { %886 = vmatprep.subr.mxu0 %v2817_v62  ;;  %2252 = vmatprep.subr.mxu1 %v3711_v36 }
 0x27e   :  { %887 = vmatpush1.msra.mxu0 %v2821_v63  ;;  %2253 = vmatpush3.msra.mxu1 %v2886_v20 }
 0x27f   :  { %888 = vmatprep.subr.mxu0 %v2824_v1  ;;  %2254 = vmatprep.subr.mxu1 %v3711_v36 }
 0x280   :  { %889 = vmatpush1.msra.mxu0 %v2830_v3  ;;  %2255 = vmatpush3.msra.mxu1 %v2896_v23 }
 0x281   :  { %890 = vmatprep.subr.mxu0 %v2834_v4  ;;  %2256 = vmatprep.subr.mxu1 %v3711_v36 }
 0x282   :  { %891 = vmatpush1.msra.mxu0 %v2839_v6  ;;  %2257 = vmatpush3.msra.mxu1 %v2906_v26 }
 0x283   :  { %892 = vmatprep.subr.mxu0 %v2843_v7  ;;  %2258 = vmatprep.subr.mxu1 %v3711_v36 }
 0x284   :  { %893 = vmatpush1.msra.mxu0 %v2849_v9  ;;  %2259 = vmatpush3.msra.mxu1 %v2919_v29 }
 0x285   :  { %894 = vmatprep.subr.mxu0 %v2853_v10  ;;  %2260 = vmatprep.subr.mxu1 %v3711_v36 }
 0x286   :  { %895 = vmatpush1.msra.mxu0 %v2859_v12  ;;  %2261 = vmatpush3.msra.mxu1 %v2925_v30 }
 0x287   :  { %896 = vmatprep.subr.mxu0 %v2863_v13  ;;  %2262 = vmatprep.subr.mxu1 %v3711_v36 }
 0x288   :  { %897 = vmatpush1.msra.mxu0 %v2869_v15  ;;  %2263 = vmatpush3.msra.mxu1 %v2930_v31 }
 0x289   :  { %898 = vmatprep.subr.mxu0 %v2873_v16  ;;  %2264 = vmatprep.subr.mxu1 %v3711_v36 }
 0x28a   :  { %899 = vmatpush1.msra.mxu0 %v2879_v18  ;;  %2265 = vmatpush3.msra.mxu1 %v2937_v32 }
 0x28b   :  { %900 = vmatprep.subr.mxu0 %v2883_v19  ;;  %2266 = vmatprep.subr.mxu1 %v3711_v36 }
 0x28c   :  { %901 = vmatpush1.msra.mxu0 %v2889_v21  ;;  %2267 = vmatpush3.msra.mxu1 %v3721_v28 }
 0x28d   :  { %902 = vmatprep.subr.mxu0 %v3722_v41  ;;  %2268 = vmatprep.subr.mxu1 %v3711_v36 }
 0x28e   :  { %903 = vmatpush1.msra.mxu0 %v3723_v45  ;;  %2269 = vmatpush3.msra.mxu1 %v3724_v27 }
 0x28f   :  { %904 = vmatprep.subr.mxu0 %v3725_v39  ;;  %2270 = vmatprep.subr.mxu1 %v3711_v36 }
 0x290   :  { %905 = vmatpush1.msra.mxu0 %v3726_v0  ;;  %938 = vmatprep.mubr.f32.mxu0 %v3711_v36 }
 0x291   :  { %2271 = vmatpush3.msra.mxu1 %v3727_v40  ;;  %2272 = vmatprep.mubr.msk.f32.mxu1 %vm2700_vm0, %v3711_v36 }
 0x292   :  { %1050 = vmatprep.subr.mxu0 %v3728_v34  ;;  %2275 = vmatprep.subr.mxu1 %v3711_v36 }
 0x331   :  { %v764_v24 = vpop.f32.mrf.mxu0  ;;  %v835_v22 = vpop.f32.mrf.mxu1 }
 0x332   :  { %v765_v38 = vadd.f32 %v764_v24, %v3729_v57  ;;  %v836_v24 = vadd.f32 %v835_v22, %v3049_v48 }
 0x333   :  { %v766_v44 = vpop.f32.mrf.mxu0  ;;  %v2239_v42 = vpop.f32.mrf.mxu1 }
 0x334   :  { %v840_v33 = vrot.slane %v765_v38, 6  ;;  %v767_v54 = vadd.f32 %v766_v44, %v3040_v37  ;;  %v860_v42 = vrot.slane %v836_v24, 6 }
 0x336   :  { %v842_v0 = vadd.f32 %v840_v33, %v3037_v60  ;;  %v850_v40 = vrot.slane %v767_v54, 6 }
 0x338   :  { %v1935_v39 = vmul.f32 -1.442695, %v842_v0  ;;  %v852_v27 = vadd.f32 %v850_v40, %v3046_v25  ;;  %v867_v40 = vrot.slane %v3134_v35, 7 }
 0x33a   :  { %2447 = vpow2.f32 %v1935_v39  ;;  %v1936_v45 = vmul.f32 -1.442695, %v852_v27 }
 0x33c   :  { %2449 = vpow2.f32 %v1936_v45 }
 0x347   :  { %v2448_v34 = vpop.eup %2447 }
 0x348   :  { %v846_v41 = vadd.f32 1.0, %v2448_v34 }
 0x349   :  { %v2450_v28 = vpop.eup %2449 }
 0x34a   :  { %2451 = vrcp.f32 %v846_v41  ;;  %v856_v57 = vadd.f32 1.0, %v2450_v28  ;;  %v1752_v28 = vsel %vm1751_vm1, %v3056_v43, %v3134_v35 }
 0x34c   :  { %2453 = vrcp.f32 %v856_v57 }
 0x357   :  { %v2452_v38 = vpop.eup %2451 }
 0x358   :  { %v862_v21 = vmul.f32 %v2452_v38, %v860_v42 }
 0x359   :  { %v2454_v0 = vpop.eup %2453 }
 0x35a   :  { %v863_v44 = vadd.f32 %v862_v21, %v3052_v51  ;;  %v865_v39 = vsub.f32 1.0, %v2454_v0  ;;  %v869_v33 = vmul.f32 %v2454_v0, %v867_v40  ;;  %v3305_v40 = vld [vmem:[#allocation7 + $0x178] sm:$0xff] }
 0x35c   :  { %2455 = vtanh.f32 %v863_v44 }
 0x369   :  { %v2456_v27 = vpop.eup %2455 }
 0x36a   :  { %v866_v45 = vmul.f32 %v2456_v27, %v865_v39  ;;  %v3302_v39 = vld [vmem:[#allocation7 + $0x168] sm:$0xff]  ;;  %v3308_v27 = vld [vmem:[#allocation7 + $0x158] sm:$0xff] }
 0x36c   :  { %v3211_v41 = vadd.f32 %v869_v33, %v866_v45  ;;  %v3312_v45 = vld [vmem:[#allocation7 + $0x150] sm:$0xff]  ;;  %v3315_v33 = vld [vmem:[#allocation7 + $0x160] sm:$0xff] }
 0x36e   :  { %v872_v22 = vrot.slane %v3211_v41, 2  ;;  %v3217_v57 = vsel %vm1753_vm2, %v1752_v28, %v3211_v41  ;;  %v1043_v54 = vrot.slane %v3211_v41, 7  ;;  %v3318_v41 = vld [vmem:[#allocation7 + $0x140] sm:$0xff]  ;;  %v3322_v28 = vld [vmem:[#allocation7 + $0x138] sm:$0xff] }
 0x370   :  { %939 = vmatmul.mubr.f32.vlgmr.msra.gmra.mxu0 %v872_v22  ;;  %2273 = vmatmul.mubr.f32.vlgmr.msra.gmra.mxu1 %v872_v22  ;;  %v3325_v22 = vld [vmem:[#allocation7 + $0x148] sm:$0xff] }
 0x371   :  { %1051 = vmatpush1.msra.mxu0 %v2780_v46  ;;  %2276 = vmatpush3.msra.mxu1 %v2827_v2  ;;  %v3730_v46 = vld [vmem:[#allocation19_spill] sm:$0xff] }
 0x372   :  { %1052 = vmatprep.subr.mxu0 %v2783_v47  ;;  %2277 = vmatprep.subr.mxu1 %v3711_v36  ;;  %v3731_v47 = vld [vmem:[#allocation24_spill] sm:$0xff] }
 0x373   :  { %1053 = vmatpush1.msra.mxu0 %v2786_v49  ;;  %2278 = vmatpush3.msra.mxu1 %v2836_v5  ;;  %v3732_v49 = vld [vmem:[#allocation20_spill] sm:$0xff] }
 0x374   :  { %1054 = vmatprep.subr.mxu0 %v2789_v50  ;;  %2279 = vmatprep.subr.mxu1 %v3711_v36  ;;  %v3733_v50 = vld [vmem:[#allocation21_spill] sm:$0xff] }
 0x375   :  { %1055 = vmatpush1.msra.mxu0 %v2793_v52  ;;  %2280 = vmatpush3.msra.mxu1 %v2846_v8  ;;  %v3734_v52 = vld [vmem:[#allocation25_spill] sm:$0xff] }
 0x376   :  { %1056 = vmatprep.subr.mxu0 %v2796_v53  ;;  %2281 = vmatprep.subr.mxu1 %v3711_v36  ;;  %v3735_v53 = vld [vmem:[#allocation22_spill] sm:$0xff] }
 0x377   :  { %1057 = vmatpush1.msra.mxu0 %v2800_v55  ;;  %2282 = vmatpush3.msra.mxu1 %v2856_v11  ;;  %v3736_v55 = vld [vmem:[#allocation23_spill] sm:$0xff] }
 0x378   :  { %1058 = vmatprep.subr.mxu0 %v2803_v56  ;;  %2283 = vmatprep.subr.mxu1 %v3711_v36  ;;  %v3737_v56 = vld [vmem:[#allocation26_spill] sm:$0xff] }
 0x379   :  { %1059 = vmatpush1.msra.mxu0 %v2807_v58  ;;  %2284 = vmatpush3.msra.mxu1 %v2866_v14  ;;  %v3284_v58 = vld [vmem:[#allocation7 + $0x170] sm:$0xff] }
 0x37a   :  { %1060 = vmatprep.subr.mxu0 %v2810_v59  ;;  %2285 = vmatprep.subr.mxu1 %v3711_v36 }
 0x37b   :  { %1061 = vmatpush1.msra.mxu0 %v2814_v61  ;;  %2286 = vmatpush3.msra.mxu1 %v2876_v17 }
 0x37c   :  { %1062 = vmatprep.subr.mxu0 %v2817_v62  ;;  %2287 = vmatprep.subr.mxu1 %v3711_v36  ;;  %v3738_v62 = vld [vmem:[#allocation28_spill] sm:$0xff] }
 0x37d   :  { %1063 = vmatpush1.msra.mxu0 %v2821_v63  ;;  %2288 = vmatpush3.msra.mxu1 %v2886_v20 }
 0x37e   :  { %1064 = vmatprep.subr.mxu0 %v2824_v1  ;;  %2289 = vmatprep.subr.mxu1 %v3711_v36 }
 0x37f   :  { %1065 = vmatpush1.msra.mxu0 %v2830_v3  ;;  %2290 = vmatpush3.msra.mxu1 %v2896_v23 }
 0x380   :  { %1066 = vmatprep.subr.mxu0 %v2834_v4  ;;  %2291 = vmatprep.subr.mxu1 %v3711_v36 }
 0x381   :  { %1067 = vmatpush1.msra.mxu0 %v2839_v6  ;;  %2292 = vmatpush3.msra.mxu1 %v2906_v26 }
 0x382   :  { %1068 = vmatprep.subr.mxu0 %v2843_v7  ;;  %2293 = vmatprep.subr.mxu1 %v3711_v36 }
 0x383   :  { %1069 = vmatpush1.msra.mxu0 %v2849_v9  ;;  %2294 = vmatpush3.msra.mxu1 %v2919_v29 }
 0x384   :  { %1070 = vmatprep.subr.mxu0 %v2853_v10  ;;  %2295 = vmatprep.subr.mxu1 %v3711_v36 }
 0x385   :  { %1071 = vmatpush1.msra.mxu0 %v2859_v12  ;;  %2296 = vmatpush3.msra.mxu1 %v2925_v30 }
 0x386   :  { %1072 = vmatprep.subr.mxu0 %v2863_v13  ;;  %2297 = vmatprep.subr.mxu1 %v3711_v36 }
 0x387   :  { %1073 = vmatpush1.msra.mxu0 %v2869_v15  ;;  %2298 = vmatpush3.msra.mxu1 %v2930_v31 }
 0x388   :  { %1074 = vmatprep.subr.mxu0 %v2873_v16  ;;  %2299 = vmatprep.subr.mxu1 %v3711_v36 }
 0x389   :  { %1075 = vmatpush1.msra.mxu0 %v2879_v18  ;;  %2300 = vmatpush3.msra.mxu1 %v2937_v32 }
 0x38a   :  { %1076 = vmatprep.subr.mxu0 %v2883_v19  ;;  %2301 = vmatprep.subr.mxu1 %v3711_v36 }
 0x38b   :  { %1077 = vmatpush1.msra.mxu0 %v3730_v46  ;;  %2302 = vmatpush3.msra.mxu1 %v3731_v47  ;;  %v3332_v46 = vld [vmem:[#allocation7 + $0x120] sm:$0xff] }
 0x38c   :  { %1078 = vmatprep.subr.mxu0 %v3732_v49  ;;  %2303 = vmatprep.subr.mxu1 %v3711_v36  ;;  %v3335_v49 = vld [vmem:[#allocation7 + $0x130] sm:$0xff] }
 0x38d   :  { %1079 = vmatpush1.msra.mxu0 %v3733_v50  ;;  %2304 = vmatpush3.msra.mxu1 %v3734_v52  ;;  %v3338_v50 = vld [vmem:[#allocation7 + $0x110] sm:$0xff] }
 0x38e   :  { %1080 = vmatprep.subr.mxu0 %v3735_v53  ;;  %2305 = vmatprep.subr.mxu1 %v3711_v36  ;;  %v3342_v53 = vld [vmem:[#allocation7 + $0x108] sm:$0xff] }
 0x38f   :  { %1081 = vmatpush1.msra.mxu0 %v3736_v55  ;;  %1114 = vmatprep.mubr.f32.mxu0 %v3711_v36  ;;  %v3346_v55 = vld [vmem:[#allocation7 + $0xf8] sm:$0xff] }
 0x390   :  { %2306 = vmatpush3.msra.mxu1 %v3737_v56  ;;  %2307 = vmatprep.mubr.msk.f32.mxu1 %vm2700_vm0, %v3711_v36 }
 0x391   :  { %1226 = vmatprep.subr.mxu0 %v3284_v58  ;;  %2310 = vmatprep.subr.mxu1 %v3711_v36 }
 0x430   :  { %v940_v59 = vpop.f32.mrf.mxu0  ;;  %v1011_v61 = vpop.f32.mrf.mxu1 }
 0x431   :  { %v941_v63 = vadd.f32 %v940_v59, %v3738_v62  ;;  %v1012_v13 = vadd.f32 %v1011_v61, %v3049_v48  ;;  %v3350_v59 = vld [vmem:[#allocation7 + $0xf0] sm:$0xff]  ;;  %v3354_v61 = vld [vmem:[#allocation7 + $0xe0] sm:$0xff] }
 0x432   :  { %v942_v1 = vpop.f32.mrf.mxu0  ;;  %v2274_v2 = vpop.f32.mrf.mxu1 }
 0x433   :  { %v1016_v3 = vrot.slane %v941_v63, 5  ;;  %v943_v4 = vadd.f32 %v942_v1, %v3040_v37  ;;  %v1036_v16 = vrot.slane %v1012_v13, 5  ;;  %v3358_v63 = vld [vmem:[#allocation7 + $0xd8] sm:$0xff]  ;;  %v3366_v1 = vld [vmem:[#allocation7 + $0xc0] sm:$0xff]  ;;  %v3374_v2 = vld [vmem:[#allocation7 + $0xa8] sm:$0xff] }
 0x435   :  { %v1018_v5 = vadd.f32 %v1016_v3, %v3037_v60  ;;  %v1026_v7 = vrot.slane %v943_v4, 5  ;;  %v3382_v3 = vld [vmem:[#allocation7 + $0x90] sm:$0xff]  ;;  %v3390_v4 = vld [vmem:[#allocation7 + $0x78] sm:$0xff] }
 0x437   :  { %v1937_v6 = vmul.f32 -1.442695, %v1018_v5  ;;  %v1028_v8 = vadd.f32 %v1026_v7, %v3046_v25  ;;  %v3398_v5 = vld [vmem:[#allocation7 + $0x60] sm:$0xff]  ;;  %v3414_v7 = vld [vmem:[#allocation7 + $0x30] sm:$0xff] }
 0x438   :  { %3739 = vst [vmem:[#allocation18_spill] sm:$0xff] %v3414_v7 }
 0x439   :  { %2457 = vpow2.f32 %v1937_v6  ;;  %v1938_v9 = vmul.f32 -1.442695, %v1028_v8  ;;  %v3406_v6 = vld [vmem:[#allocation7 + $0x48] sm:$0xff]  ;;  %v3422_v8 = vld [vmem:[#allocation7 + $0x18] sm:$0xff] }
 0x43a   :  { %3741 = vst [vmem:[#allocation24_spill] sm:$0xff] %v3422_v8 }
 0x43b   :  { %2459 = vpow2.f32 %v1938_v9  ;;  %v3430_v9 = vld [vmem:[#allocation7] sm:$0xff] }
 0x43c   :  { %3743 = vst [vmem:[#allocation21_spill] sm:$0xff] %v3430_v9 }
 0x446   :  { %v2458_v10 = vpop.eup %2457 }
 0x447   :  { %v1022_v11 = vadd.f32 1.0, %v2458_v10 }
 0x448   :  { %v2460_v12 = vpop.eup %2459 }
 0x449   :  { %2461 = vrcp.f32 %v1022_v11  ;;  %v1032_v15 = vadd.f32 1.0, %v2460_v12 }
 0x44b   :  { %2463 = vrcp.f32 %v1032_v15 }
 0x456   :  { %v2462_v18 = vpop.eup %2461 }
 0x457   :  { %v1038_v19 = vmul.f32 %v2462_v18, %v1036_v16 }
 0x458   :  { %v2464_v43 = vpop.eup %2463 }
 0x459   :  { %v1039_v21 = vadd.f32 %v1038_v19, %v3052_v51  ;;  %v1041_v35 = vsub.f32 1.0, %v2464_v43  ;;  %v1045_v42 = vmul.f32 %v2464_v43, %v1043_v54 }
 0x45b   :  { %2465 = vtanh.f32 %v1039_v21 }
 0x468   :  { %v2466_v34 = vpop.eup %2465 }
 0x469   :  { %v1042_v24 = vmul.f32 %v2466_v34, %v1041_v35 }
 0x46b   :  { %v3295_v38 = vadd.f32 %v1045_v42, %v1042_v24 }
 0x46d   :  { %v1048_v44 = vrot.slane %v3295_v38, 3  ;;  %v3300_v0 = vsel %vm1755_vm3, %v3217_v57, %v3295_v38  ;;  %v3328_v57 = vld [vmem:[#allocation7 + $0x128] sm:$0xff] }
 0x46f   :  { %1115 = vmatmul.mubr.f32.vlgmr.msra.gmra.mxu0 %v1048_v44  ;;  %2308 = vmatmul.mubr.f32.vlgmr.msra.gmra.mxu1 %v1048_v44 }
 0x470   :  { %1227 = vmatpush1.msra.mxu0 %v3302_v39  ;;  %2311 = vmatpush3.msra.mxu1 %v3305_v40 }
 0x471   :  { %1228 = vmatprep.subr.mxu0 %v3308_v27  ;;  %2312 = vmatprep.subr.mxu1 %v3711_v36 }
 0x472   :  { %1229 = vmatpush1.msra.mxu0 %v3312_v45  ;;  %2313 = vmatpush3.msra.mxu1 %v3315_v33 }
 0x473   :  { %1230 = vmatprep.subr.mxu0 %v3318_v41  ;;  %2314 = vmatprep.subr.mxu1 %v3711_v36 }
 0x474   :  { %1231 = vmatpush1.msra.mxu0 %v3322_v28  ;;  %2315 = vmatpush3.msra.mxu1 %v3325_v22 }
 0x475   :  { %1232 = vmatprep.subr.mxu0 %v3328_v57  ;;  %2316 = vmatprep.subr.mxu1 %v3711_v36 }
 0x476   :  { %1233 = vmatpush1.msra.mxu0 %v3332_v46  ;;  %2317 = vmatpush3.msra.mxu1 %v3335_v49 }
 0x477   :  { %1234 = vmatprep.subr.mxu0 %v3338_v50  ;;  %2318 = vmatprep.subr.mxu1 %v3711_v36 }
 0x478   :  { %1235 = vmatpush1.msra.mxu0 %v3342_v53  ;;  %2319 = vmatpush3.msra.mxu1 %v2866_v14  ;;  %v3362_v14 = vld [vmem:[#allocation7 + $0xc8] sm:$0xff] }
 0x479   :  { %1236 = vmatprep.subr.mxu0 %v3346_v55  ;;  %2320 = vmatprep.subr.mxu1 %v3711_v36 }
 0x47a   :  { %1237 = vmatpush1.msra.mxu0 %v3350_v59  ;;  %2321 = vmatpush3.msra.mxu1 %v2876_v17  ;;  %v3370_v17 = vld [vmem:[#allocation7 + $0xb0] sm:$0xff] }
 0x47b   :  { %1238 = vmatprep.subr.mxu0 %v3354_v61  ;;  %2322 = vmatprep.subr.mxu1 %v3711_v36 }
 0x47c   :  { %1239 = vmatpush1.msra.mxu0 %v3358_v63  ;;  %2323 = vmatpush3.msra.mxu1 %v2886_v20  ;;  %v3378_v20 = vld [vmem:[#allocation7 + $0x98] sm:$0xff] }
 0x47d   :  { %1240 = vmatprep.subr.mxu0 %v3362_v14  ;;  %2324 = vmatprep.subr.mxu1 %v3711_v36 }
 0x47e   :  { %1241 = vmatpush1.msra.mxu0 %v3366_v1  ;;  %2325 = vmatpush3.msra.mxu1 %v2896_v23  ;;  %v3386_v23 = vld [vmem:[#allocation7 + $0x80] sm:$0xff] }
 0x47f   :  { %1242 = vmatprep.subr.mxu0 %v3370_v17  ;;  %2326 = vmatprep.subr.mxu1 %v3711_v36 }
 0x480   :  { %1243 = vmatpush1.msra.mxu0 %v3374_v2  ;;  %2327 = vmatpush3.msra.mxu1 %v2906_v26  ;;  %v3394_v26 = vld [vmem:[#allocation7 + $0x68] sm:$0xff] }
 0x481   :  { %1244 = vmatprep.subr.mxu0 %v3378_v20  ;;  %2328 = vmatprep.subr.mxu1 %v3711_v36 }
 0x482   :  { %1245 = vmatpush1.msra.mxu0 %v3382_v3  ;;  %2329 = vmatpush3.msra.mxu1 %v2919_v29  ;;  %v3402_v29 = vld [vmem:[#allocation7 + $0x50] sm:$0xff] }
 0x483   :  { %1246 = vmatprep.subr.mxu0 %v3386_v23  ;;  %2330 = vmatprep.subr.mxu1 %v3711_v36 }
 0x484   :  { %1247 = vmatpush1.msra.mxu0 %v3390_v4  ;;  %2331 = vmatpush3.msra.mxu1 %v2925_v30  ;;  %v3410_v30 = vld [vmem:[#allocation7 + $0x38] sm:$0xff] }
 0x485   :  { %1248 = vmatprep.subr.mxu0 %v3394_v26  ;;  %2332 = vmatprep.subr.mxu1 %v3711_v36 }
 0x486   :  { %1249 = vmatpush1.msra.mxu0 %v3398_v5  ;;  %2333 = vmatpush3.msra.mxu1 %v2930_v31  ;;  %v3418_v31 = vld [vmem:[#allocation7 + $0x20] sm:$0xff] }
 0x487   :  { %1250 = vmatprep.subr.mxu0 %v3402_v29  ;;  %2334 = vmatprep.subr.mxu1 %v3711_v36  ;;  %3740 = vst [vmem:[#allocation19_spill] sm:$0xff] %v3418_v31 }
 0x488   :  { %1251 = vmatpush1.msra.mxu0 %v3406_v6  ;;  %2335 = vmatpush3.msra.mxu1 %v2937_v32  ;;  %v3426_v32 = vld [vmem:[#allocation7 + $0x8] sm:$0xff] }
 0x489   :  { %1252 = vmatprep.subr.mxu0 %v3410_v30  ;;  %2336 = vmatprep.subr.mxu1 %v3711_v36  ;;  %3742 = vst [vmem:[#allocation20_spill] sm:$0xff] %v3426_v32 }
 0x48a   :  { %1253 = vmatpush1.msra.mxu0 %v3414_v7  ;;  %2337 = vmatpush3.msra.mxu1 %v3731_v47 }
 0x48b   :  { %1254 = vmatprep.subr.mxu0 %v3418_v31  ;;  %2338 = vmatprep.subr.mxu1 %v3711_v36 }
 0x48c   :  { %1255 = vmatpush1.msra.mxu0 %v3422_v8  ;;  %2339 = vmatpush3.msra.mxu1 %v3734_v52 }
 0x48d   :  { %1256 = vmatprep.subr.mxu0 %v3426_v32  ;;  %2340 = vmatprep.subr.mxu1 %v3711_v36 }
 0x48e   :  { %1257 = vmatpush1.msra.mxu0 %v3430_v9  ;;  %1290 = vmatprep.mubr.f32.mxu0 %v3711_v36 }
 0x48f   :  { %2341 = vmatpush3.msra.mxu1 %v3737_v56  ;;  %2342 = vmatprep.mubr.msk.f32.mxu1 %vm2700_vm0, %v3711_v36 }
 0x490   :  { %1402 = vmatprep.subr.mxu0 %v3284_v58  ;;  %2345 = vmatprep.subr.mxu1 %v3711_v36 }
 0x52f   :  { %v1116_v47 = vpop.f32.mrf.mxu0  ;;  %v1187_v52 = vpop.f32.mrf.mxu1 }
 0x530   :  { %v1117_v10 = vadd.f32 %v1116_v47, %v3738_v62  ;;  %v1188_v34 = vadd.f32 %v1187_v52, %v3049_v48 }
 0x531   :  { %v1118_v11 = vpop.f32.mrf.mxu0  ;;  %v2309_v12 = vpop.f32.mrf.mxu1 }
 0x532   :  { %v1192_v13 = vrot.slane %v1117_v10, 4  ;;  %v1119_v15 = vadd.f32 %v1118_v11, %v3040_v37  ;;  %v1212_v42 = vrot.slane %v1188_v34, 4  ;;  %v3506_v34 = vld [vmem:[#allocation7 + $0x88] sm:$0xff] }
 0x534   :  { %v1194_v16 = vadd.f32 %v1192_v13, %v3037_v60  ;;  %v1202_v56 = vrot.slane %v1119_v15, 4  ;;  %v1219_v13 = vrot.slane %v3295_v38, 7  ;;  %v3470_v38 = vld [vmem:[#allocation7 + $0x118] sm:$0xff] }
 0x536   :  { %v1939_v18 = vmul.f32 -1.442695, %v1194_v16  ;;  %v1204_v19 = vadd.f32 %v1202_v56, %v3046_v25 }
 0x538   :  { %2467 = vpow2.f32 %v1939_v18  ;;  %v1940_v21 = vmul.f32 -1.442695, %v1204_v19 }
 0x53a   :  { %2469 = vpow2.f32 %v1940_v21  ;;  %v3482_v21 = vld [vmem:[#allocation7 + $0xe8] sm:$0xff] }
 0x545   :  { %v2468_v43 = vpop.eup %2467 }
 0x546   :  { %v1198_v35 = vadd.f32 1.0, %v2468_v43  ;;  %v3488_v43 = vld [vmem:[#allocation7 + $0xd0] sm:$0xff] }
 0x547   :  { %v2470_v54 = vpop.eup %2469 }
 0x548   :  { %2471 = vrcp.f32 %v1198_v35  ;;  %v1208_v24 = vadd.f32 1.0, %v2470_v54  ;;  %v3494_v35 = vld [vmem:[#allocation7 + $0xb8] sm:$0xff]  ;;  %v3500_v54 = vld [vmem:[#allocation7 + $0xa0] sm:$0xff] }
 0x54a   :  { %2473 = vrcp.f32 %v1208_v24  ;;  %v3512_v24 = vld [vmem:[#allocation7 + $0x70] sm:$0xff] }
 0x555   :  { %v2472_v44 = vpop.eup %2471 }
 0x556   :  { %v1214_v47 = vmul.f32 %v2472_v44, %v1212_v42  ;;  %v3518_v42 = vld [vmem:[#allocation7 + $0x58] sm:$0xff]  ;;  %v3524_v44 = vld [vmem:[#allocation7 + $0x40] sm:$0xff] }
 0x557   :  { %v2474_v11 = vpop.eup %2473  ;;  %3744 = vst [vmem:[#allocation25_spill] sm:$0xff] %v3524_v44 }
 0x558   :  { %v1215_v10 = vadd.f32 %v1214_v47, %v3052_v51  ;;  %v1217_v12 = vsub.f32 1.0, %v2474_v11  ;;  %v1221_v18 = vmul.f32 %v2474_v11, %v1219_v13  ;;  %v3530_v47 = vld [vmem:[#allocation7 + $0x28] sm:$0xff] }
 0x559   :  { %3745 = vst [vmem:[#allocation22_spill] sm:$0xff] %v3530_v47 }
 0x55a   :  { %2475 = vtanh.f32 %v1215_v10  ;;  %v3537_v10 = vld [vmem:[#allocation7 + $0x10] sm:$0xff] }
 0x55b   :  { %3746 = vst [vmem:[#allocation23_spill] sm:$0xff] %v3537_v10 }
 0x567   :  { %v2476_v15 = vpop.eup %2475 }
 0x568   :  { %v1218_v16 = vmul.f32 %v2476_v15, %v1217_v12 }
 0x56a   :  { %v3446_v56 = vadd.f32 %v1221_v18, %v1218_v16 }
 0x56c   :  { %v1224_v52 = vrot.slane %v3446_v56, 4  ;;  %v3451_v19 = vsel %vm1757_vm4, %v3300_v0, %v3446_v56  ;;  %v3476_v0 = vld [vmem:[#allocation7 + $0x100] sm:$0xff] }
 0x56e   :  { %1291 = vmatmul.mubr.f32.vlgmr.msra.gmra.mxu0 %v1224_v52  ;;  %2343 = vmatmul.mubr.f32.vlgmr.msra.gmra.mxu1 %v1224_v52 }
 0x56f   :  { %1403 = vmatpush1.msra.mxu0 %v3302_v39  ;;  %2346 = vmatpush3.msra.mxu1 %v3305_v40 }
 0x570   :  { %1404 = vmatprep.subr.mxu0 %v3308_v27  ;;  %2347 = vmatprep.subr.mxu1 %v3711_v36 }
 0x571   :  { %1405 = vmatpush1.msra.mxu0 %v3312_v45  ;;  %2348 = vmatpush3.msra.mxu1 %v3315_v33 }
 0x572   :  { %1406 = vmatprep.subr.mxu0 %v3318_v41  ;;  %2349 = vmatprep.subr.mxu1 %v3711_v36 }
 0x573   :  { %1407 = vmatpush1.msra.mxu0 %v3322_v28  ;;  %2350 = vmatpush3.msra.mxu1 %v3325_v22 }
 0x574   :  { %1408 = vmatprep.subr.mxu0 %v3328_v57  ;;  %2351 = vmatprep.subr.mxu1 %v3711_v36 }
 0x575   :  { %1409 = vmatpush1.msra.mxu0 %v3332_v46  ;;  %2352 = vmatpush3.msra.mxu1 %v3335_v49 }
 0x576   :  { %1410 = vmatprep.subr.mxu0 %v3338_v50  ;;  %2353 = vmatprep.subr.mxu1 %v3711_v36 }
 0x577   :  { %1411 = vmatpush1.msra.mxu0 %v3342_v53  ;;  %2354 = vmatpush3.msra.mxu1 %v3470_v38 }
 0x578   :  { %1412 = vmatprep.subr.mxu0 %v3346_v55  ;;  %2355 = vmatprep.subr.mxu1 %v3711_v36 }
 0x579   :  { %1413 = vmatpush1.msra.mxu0 %v3350_v59  ;;  %2356 = vmatpush3.msra.mxu1 %v3476_v0 }
 0x57a   :  { %1414 = vmatprep.subr.mxu0 %v3354_v61  ;;  %2357 = vmatprep.subr.mxu1 %v3711_v36 }
 0x57b   :  { %1415 = vmatpush1.msra.mxu0 %v3358_v63  ;;  %2358 = vmatpush3.msra.mxu1 %v3482_v21 }
 0x57c   :  { %1416 = vmatprep.subr.mxu0 %v3362_v14  ;;  %2359 = vmatprep.subr.mxu1 %v3711_v36 }
 0x57d   :  { %1417 = vmatpush1.msra.mxu0 %v3366_v1  ;;  %2360 = vmatpush3.msra.mxu1 %v3488_v43 }
 0x57e   :  { %1418 = vmatprep.subr.mxu0 %v3370_v17  ;;  %2361 = vmatprep.subr.mxu1 %v3711_v36 }
 0x57f   :  { %1419 = vmatpush1.msra.mxu0 %v3374_v2  ;;  %2362 = vmatpush3.msra.mxu1 %v3494_v35 }
 0x580   :  { %1420 = vmatprep.subr.mxu0 %v3378_v20  ;;  %2363 = vmatprep.subr.mxu1 %v3711_v36 }
 0x581   :  { %1421 = vmatpush1.msra.mxu0 %v3382_v3  ;;  %2364 = vmatpush3.msra.mxu1 %v3500_v54 }
 0x582   :  { %1422 = vmatprep.subr.mxu0 %v3386_v23  ;;  %2365 = vmatprep.subr.mxu1 %v3711_v36 }
 0x583   :  { %1423 = vmatpush1.msra.mxu0 %v3390_v4  ;;  %2366 = vmatpush3.msra.mxu1 %v3506_v34 }
 0x584   :  { %1424 = vmatprep.subr.mxu0 %v3394_v26  ;;  %2367 = vmatprep.subr.mxu1 %v3711_v36 }
 0x585   :  { %1425 = vmatpush1.msra.mxu0 %v3398_v5  ;;  %2368 = vmatpush3.msra.mxu1 %v3512_v24 }
 0x586   :  { %1426 = vmatprep.subr.mxu0 %v3402_v29  ;;  %2369 = vmatprep.subr.mxu1 %v3711_v36 }
 0x587   :  { %1427 = vmatpush1.msra.mxu0 %v3406_v6  ;;  %2370 = vmatpush3.msra.mxu1 %v3518_v42 }
 0x588   :  { %1428 = vmatprep.subr.mxu0 %v3410_v30  ;;  %2371 = vmatprep.subr.mxu1 %v3711_v36 }
 0x589   :  { %1429 = vmatpush1.msra.mxu0 %v3414_v7  ;;  %2372 = vmatpush3.msra.mxu1 %v3524_v44 }
 0x58a   :  { %1430 = vmatprep.subr.mxu0 %v3418_v31  ;;  %2373 = vmatprep.subr.mxu1 %v3711_v36 }
 0x58b   :  { %1431 = vmatpush1.msra.mxu0 %v3422_v8  ;;  %2374 = vmatpush3.msra.mxu1 %v3530_v47 }
 0x58c   :  { %1432 = vmatprep.subr.mxu0 %v3426_v32  ;;  %2375 = vmatprep.subr.mxu1 %v3711_v36 }
 0x58d   :  { %1433 = vmatpush1.msra.mxu0 %v3430_v9  ;;  %1466 = vmatprep.mubr.f32.mxu0 %v3711_v36 }
 0x58e   :  { %2376 = vmatpush3.msra.mxu1 %v3537_v10  ;;  %2377 = vmatprep.mubr.msk.f32.mxu1 %vm2700_vm0, %v3711_v36 }
 0x58f   :  { %1578 = vmatprep.subr.mxu0 %v3284_v58  ;;  %2380 = vmatprep.subr.mxu1 %v3711_v36 }
 0x62e   :  { %v1292_v11 = vpop.f32.mrf.mxu0  ;;  %v1363_v12 = vpop.f32.mrf.mxu1 }
 0x62f   :  { %v1293_v13 = vadd.f32 %v1292_v11, %v3738_v62  ;;  %v1364_v11 = vadd.f32 %v1363_v12, %v3049_v48 }
 0x630   :  { %v1294_v15 = vpop.f32.mrf.mxu0  ;;  %v2344_v16 = vpop.f32.mrf.mxu1 }
 0x631   :  { %v1368_v18 = vrot.slane %v1293_v13, 3  ;;  %v1295_v52 = vadd.f32 %v1294_v15, %v3040_v37  ;;  %v1388_v16 = vrot.slane %v1364_v11, 3  ;;  %v1791_v11 = vld [vmem:[#allocation8 + $0xc8] sm:$0xff] }
 0x633   :  { %v1370_v9 = vadd.f32 %v1368_v18, %v3037_v60  ;;  %v1378_v10 = vrot.slane %v1295_v52, 3  ;;  %v1793_v52 = vld [vmem:[#allocation8 + $0xd8] sm:$0xff] }
 0x635   :  { %v1941_v32 = vmul.f32 -1.442695, %v1370_v9  ;;  %v1380_v47 = vadd.f32 %v1378_v10, %v3046_v25  ;;  %v1395_v10 = vrot.slane %v3446_v56, 7 }
 0x637   :  { %2477 = vpow2.f32 %v1941_v32  ;;  %v1942_v8 = vmul.f32 -1.442695, %v1380_v47 }
 0x639   :  { %2479 = vpow2.f32 %v1942_v8 }
 0x644   :  { %v2478_v58 = vpop.eup %2477 }
 0x645   :  { %v1374_v31 = vadd.f32 1.0, %v2478_v58  ;;  %v1792_v58 = vld [vmem:[#allocation8 + $0xd0] sm:$0xff] }
 0x646   :  { %v2480_v44 = vpop.eup %2479 }
 0x647   :  { %2481 = vrcp.f32 %v1374_v31  ;;  %v1384_v62 = vadd.f32 1.0, %v2480_v44 }
 0x649   :  { %2483 = vrcp.f32 %v1384_v62  ;;  %v3747_v62 = vld [vmem:[#allocation18_spill] sm:$0xff] }
 0x654   :  { %v2482_v13 = vpop.eup %2481 }
 0x655   :  { %v1390_v7 = vmul.f32 %v2482_v13, %v1388_v16  ;;  %v1790_v16 = vld [vmem:[#allocation8 + $0xc0] sm:$0xff]  ;;  %v1789_v13 = vld [vmem:[#allocation8 + $0xb8] sm:$0xff] }
 0x656   :  { %v2484_v9 = vpop.eup %2483 }
 0x657   :  { %v1391_v15 = vadd.f32 %v1390_v7, %v3052_v51  ;;  %v1393_v32 = vsub.f32 1.0, %v2484_v9  ;;  %v1397_v18 = vmul.f32 %v2484_v9, %v1395_v10  ;;  %v1786_v9 = vld [vmem:[#allocation8 + $0xa0] sm:$0xff]  ;;  %v1784_v10 = vld [vmem:[#allocation8 + $0x90] sm:$0xff] }
 0x659   :  { %2485 = vtanh.f32 %v1391_v15  ;;  %v1788_v15 = vld [vmem:[#allocation8 + $0xb0] sm:$0xff] }
 0x666   :  { %v2486_v47 = vpop.eup %2485 }
 0x667   :  { %v1394_v8 = vmul.f32 %v2486_v47, %v1393_v32  ;;  %v1785_v32 = vld [vmem:[#allocation8 + $0x98] sm:$0xff]  ;;  %v1783_v47 = vld [vmem:[#allocation8 + $0x88] sm:$0xff] }
 0x669   :  { %v3551_v31 = vadd.f32 %v1397_v18, %v1394_v8  ;;  %v1782_v8 = vld [vmem:[#allocation8 + $0x80] sm:$0xff]  ;;  %v1781_v18 = vld [vmem:[#allocation8 + $0x78] sm:$0xff] }
 0x66b   :  { %v1400_v12 = vrot.slane %v3551_v31, 5  ;;  %v3556_v44 = vsel %vm1759_vm5, %v3451_v19, %v3551_v31  ;;  %v1571_v56 = vrot.slane %v3551_v31, 7  ;;  %v1780_v31 = vld [vmem:[#allocation8 + $0x70] sm:$0xff] }
 0x66d   :  { %1467 = vmatmul.mubr.f32.vlgmr.msra.gmra.mxu0 %v1400_v12  ;;  %2378 = vmatmul.mubr.f32.vlgmr.msra.gmra.mxu1 %v1400_v12  ;;  %v1779_v12 = vld [vmem:[#allocation8 + $0x68] sm:$0xff] }
 0x66e   :  { %1579 = vmatpush1.msra.mxu0 %v3302_v39  ;;  %2381 = vmatpush3.msra.mxu1 %v3305_v40  ;;  %v3748_v39 = vld [vmem:[#allocation25_spill] sm:$0xff]  ;;  %v3749_v40 = vld [vmem:[#allocation19_spill] sm:$0xff] }
 0x66f   :  { %1580 = vmatprep.subr.mxu0 %v3308_v27  ;;  %2382 = vmatprep.subr.mxu1 %v3711_v36  ;;  %v3750_v27 = vld [vmem:[#allocation24_spill] sm:$0xff] }
 0x670   :  { %1581 = vmatpush1.msra.mxu0 %v3312_v45  ;;  %2383 = vmatpush3.msra.mxu1 %v3315_v33  ;;  %v3751_v45 = vld [vmem:[#allocation22_spill] sm:$0xff]  ;;  %v3752_v33 = vld [vmem:[#allocation20_spill] sm:$0xff] }
 0x671   :  { %1582 = vmatprep.subr.mxu0 %v3318_v41  ;;  %2384 = vmatprep.subr.mxu1 %v3711_v36  ;;  %v3753_v41 = vld [vmem:[#allocation21_spill] sm:$0xff] }
 0x672   :  { %1583 = vmatpush1.msra.mxu0 %v3322_v28  ;;  %2385 = vmatpush3.msra.mxu1 %v3325_v22  ;;  %v3754_v28 = vld [vmem:[#allocation23_spill] sm:$0xff] }
 0x673   :  { %1584 = vmatprep.subr.mxu0 %v3328_v57  ;;  %2386 = vmatprep.subr.mxu1 %v3711_v36 }
 0x674   :  { %1585 = vmatpush1.msra.mxu0 %v3332_v46  ;;  %2387 = vmatpush3.msra.mxu1 %v3335_v49  ;;  %v3755_v46 = vld [vmem:[#allocation28_spill] sm:$0xff] }
 0x675   :  { %1586 = vmatprep.subr.mxu0 %v3338_v50  ;;  %2388 = vmatprep.subr.mxu1 %v3711_v36 }
 0x676   :  { %1587 = vmatpush1.msra.mxu0 %v3342_v53  ;;  %2389 = vmatpush3.msra.mxu1 %v3470_v38 }
 0x677   :  { %1588 = vmatprep.subr.mxu0 %v3346_v55  ;;  %2390 = vmatprep.subr.mxu1 %v3711_v36 }
 0x678   :  { %1589 = vmatpush1.msra.mxu0 %v3350_v59  ;;  %2391 = vmatpush3.msra.mxu1 %v3476_v0 }
 0x679   :  { %1590 = vmatprep.subr.mxu0 %v3354_v61  ;;  %2392 = vmatprep.subr.mxu1 %v3711_v36 }
 0x67a   :  { %1591 = vmatpush1.msra.mxu0 %v3358_v63  ;;  %2393 = vmatpush3.msra.mxu1 %v3482_v21 }
 0x67b   :  { %1592 = vmatprep.subr.mxu0 %v3362_v14  ;;  %2394 = vmatprep.subr.mxu1 %v3711_v36 }
 0x67c   :  { %1593 = vmatpush1.msra.mxu0 %v3366_v1  ;;  %2395 = vmatpush3.msra.mxu1 %v3488_v43 }
 0x67d   :  { %1594 = vmatprep.subr.mxu0 %v3370_v17  ;;  %2396 = vmatprep.subr.mxu1 %v3711_v36 }
 0x67e   :  { %1595 = vmatpush1.msra.mxu0 %v3374_v2  ;;  %2397 = vmatpush3.msra.mxu1 %v3494_v35 }
 0x67f   :  { %1596 = vmatprep.subr.mxu0 %v3378_v20  ;;  %2398 = vmatprep.subr.mxu1 %v3711_v36 }
 0x680   :  { %1597 = vmatpush1.msra.mxu0 %v3382_v3  ;;  %2399 = vmatpush3.msra.mxu1 %v3500_v54  ;;  %v1797_v54 = vld [vmem:[#allocation8 + $0xf8] sm:$0xff] }
 0x681   :  { %1598 = vmatprep.subr.mxu0 %v3386_v23  ;;  %2400 = vmatprep.subr.mxu1 %v3711_v36 }
 0x682   :  { %1599 = vmatpush1.msra.mxu0 %v3390_v4  ;;  %2401 = vmatpush3.msra.mxu1 %v3506_v34  ;;  %v1796_v34 = vld [vmem:[#allocation8 + $0xf0] sm:$0xff] }
 0x683   :  { %1600 = vmatprep.subr.mxu0 %v3394_v26  ;;  %2402 = vmatprep.subr.mxu1 %v3711_v36 }
 0x684   :  { %1601 = vmatpush1.msra.mxu0 %v3398_v5  ;;  %2403 = vmatpush3.msra.mxu1 %v3512_v24  ;;  %v1795_v24 = vld [vmem:[#allocation8 + $0xe8] sm:$0xff] }
 0x685   :  { %1602 = vmatprep.subr.mxu0 %v3402_v29  ;;  %2404 = vmatprep.subr.mxu1 %v3711_v36 }
 0x686   :  { %1603 = vmatpush1.msra.mxu0 %v3406_v6  ;;  %2405 = vmatpush3.msra.mxu1 %v3518_v42  ;;  %v1794_v42 = vld [vmem:[#allocation8 + $0xe0] sm:$0xff] }
 0x687   :  { %1604 = vmatprep.subr.mxu0 %v3410_v30  ;;  %2406 = vmatprep.subr.mxu1 %v3711_v36 }
 0x688   :  { %1605 = vmatpush1.msra.mxu0 %v3747_v62  ;;  %2407 = vmatpush3.msra.mxu1 %v3748_v39  ;;  %v1777_v62 = vld [vmem:[#allocation8 + $0x58] sm:$0xff]  ;;  %v1776_v39 = vld [vmem:[#allocation8 + $0x50] sm:$0xff] }
 0x689   :  { %1606 = vmatprep.subr.mxu0 %v3749_v40  ;;  %2408 = vmatprep.subr.mxu1 %v3711_v36  ;;  %v1775_v40 = vld [vmem:[#allocation8 + $0x48] sm:$0xff] }
 0x68a   :  { %1607 = vmatpush1.msra.mxu0 %v3750_v27  ;;  %2409 = vmatpush3.msra.mxu1 %v3751_v45  ;;  %v1774_v27 = vld [vmem:[#allocation8 + $0x40] sm:$0xff]  ;;  %v1773_v45 = vld [vmem:[#allocation8 + $0x38] sm:$0xff] }
 0x68b   :  { %1608 = vmatprep.subr.mxu0 %v3752_v33  ;;  %2410 = vmatprep.subr.mxu1 %v3711_v36  ;;  %v1772_v33 = vld [vmem:[#allocation8 + $0x30] sm:$0xff] }
 0x68c   :  { %1609 = vmatpush1.msra.mxu0 %v3753_v41  ;;  %1642 = vmatprep.mubr.f32.mxu0 %v3711_v36  ;;  %v1771_v41 = vld [vmem:[#allocation8 + $0x28] sm:$0xff] }
 0x68d   :  { %2411 = vmatpush3.msra.mxu1 %v3754_v28  ;;  %2412 = vmatprep.mubr.msk.f32.mxu1 %vm2700_vm0, %v3711_v36  ;;  %v1770_v28 = vld [vmem:[#allocation8 + $0x20] sm:$0xff] }
 0x68e   :  { %1810 = vmatprep.subr.mxu0 %v1797_v54 }
 0x72d   :  { %v1468_v22 = vpop.f32.mrf.mxu0  ;;  %v1539_v57 = vpop.f32.mrf.mxu1 }
 0x72e   :  { %v1469_v49 = vadd.f32 %v1468_v22, %v3755_v46  ;;  %v1540_v23 = vadd.f32 %v1539_v57, %v3049_v48  ;;  %v1769_v22 = vld [vmem:[#allocation8 + $0x18] sm:$0xff]  ;;  %v1768_v57 = vld [vmem:[#allocation8 + $0x10] sm:$0xff] }
 0x72f   :  { %v1470_v50 = vpop.f32.mrf.mxu0  ;;  %v2379_v53 = vpop.f32.mrf.mxu1 }
 0x730   :  { %v1544_v55 = vrot.slane %v1469_v49, 2  ;;  %v1471_v59 = vadd.f32 %v1470_v50, %v3040_v37  ;;  %v1564_v26 = vrot.slane %v1540_v23, 2  ;;  %v1767_v49 = vld [vmem:[#allocation8 + $0x8] sm:$0xff]  ;;  %v1766_v50 = vld [vmem:[#allocation8] sm:$0xff] }
 0x732   :  { %v1546_v61 = vadd.f32 %v1544_v55, %v3037_v60  ;;  %v1554_v14 = vrot.slane %v1471_v59, 2 }
 0x734   :  { %v1943_v63 = vmul.f32 -1.442695, %v1546_v61  ;;  %v1556_v1 = vadd.f32 %v1554_v14, %v3046_v25 }
 0x736   :  { %2487 = vpow2.f32 %v1943_v63  ;;  %v1944_v17 = vmul.f32 -1.442695, %v1556_v1 }
 0x738   :  { %2489 = vpow2.f32 %v1944_v17 }
 0x743   :  { %v2488_v2 = vpop.eup %2487 }
 0x744   :  { %v1550_v20 = vadd.f32 1.0, %v2488_v2 }
 0x745   :  { %v2490_v3 = vpop.eup %2489 }
 0x746   :  { %2491 = vrcp.f32 %v1550_v20  ;;  %v1560_v4 = vadd.f32 1.0, %v2490_v3 }
 0x748   :  { %2493 = vrcp.f32 %v1560_v4 }
 0x753   :  { %v2492_v5 = vpop.eup %2491 }
 0x754   :  { %v1566_v29 = vmul.f32 %v2492_v5, %v1564_v26 }
 0x755   :  { %v2494_v30 = vpop.eup %2493 }
 0x756   :  { %v1567_v6 = vadd.f32 %v1566_v29, %v3052_v51  ;;  %v1569_v7 = vsub.f32 1.0, %v2494_v30  ;;  %v1573_v0 = vmul.f32 %v2494_v30, %v1571_v56 }
 0x758   :  { %2495 = vtanh.f32 %v1567_v6 }
 0x765   :  { %v2496_v19 = vpop.eup %2495 }
 0x766   :  { %v1570_v38 = vmul.f32 %v2496_v19, %v1569_v7 }
 0x768   :  { %v3630_v21 = vadd.f32 %v1573_v0, %v1570_v38 }
 0x76a   :  { %v1576_v43 = vrot.slane %v3630_v21, 6  ;;  %v3635_v35 = vsel %vm1761_vm6, %v3556_v44, %v3630_v21  ;;  %v1778_v44 = vld [vmem:[#allocation8 + $0x60] sm:$0xff] }
 0x76c   :  { %1643 = vmatmul.mubr.f32.vlgmr.msra.gmra.mxu0 %v1576_v43  ;;  %2413 = vmatmul.mubr.f32.vlgmr.msra.gmra.mxu1 %v1576_v43 }
 0x76d   :  { %1874 = vmatprep.mubr.f32.mxu0 %v3711_v36  ;;  %1811 = vmatpush1.msra.mxu0 %v1796_v34  ;;  %v1787_v36 = vld [vmem:[#allocation8 + $0xa8] sm:$0xff]  ;;  %v3756_v34 = vld [vmem:[#allocation27_spill] sm:$0xff] }
 0x76e   :  { %1812 = vmatprep.subr.mxu0 %v1795_v24  ;;  %v3757_v24 = vld [vmem:[#allocation29_spill] sm:$0xff] }
 0x76f   :  { %1813 = vmatpush1.msra.mxu0 %v1794_v42 }
 0x770   :  { %1814 = vmatprep.subr.mxu0 %v1793_v52 }
 0x771   :  { %1815 = vmatpush1.msra.mxu0 %v1792_v58 }
 0x772   :  { %1816 = vmatprep.subr.mxu0 %v1791_v11 }
 0x773   :  { %1817 = vmatpush1.msra.mxu0 %v1790_v16 }
 0x774   :  { %1818 = vmatprep.subr.mxu0 %v1789_v13 }
 0x775   :  { %1819 = vmatpush1.msra.mxu0 %v1788_v15 }
 0x776   :  { %1820 = vmatprep.subr.mxu0 %v1787_v36 }
 0x777   :  { %1821 = vmatpush1.msra.mxu0 %v1786_v9 }
 0x778   :  { %1822 = vmatprep.subr.mxu0 %v1785_v32 }
 0x779   :  { %1823 = vmatpush1.msra.mxu0 %v1784_v10 }
 0x77a   :  { %1824 = vmatprep.subr.mxu0 %v1783_v47 }
 0x77b   :  { %1825 = vmatpush1.msra.mxu0 %v1782_v8 }
 0x77c   :  { %1826 = vmatprep.subr.mxu0 %v1781_v18 }
 0x77d   :  { %1827 = vmatpush1.msra.mxu0 %v1780_v31 }
 0x77e   :  { %1828 = vmatprep.subr.mxu0 %v1779_v12 }
 0x77f   :  { %1829 = vmatpush1.msra.mxu0 %v1778_v44 }
 0x780   :  { %1830 = vmatprep.subr.mxu0 %v1777_v62 }
 0x781   :  { %1831 = vmatpush1.msra.mxu0 %v1776_v39 }
 0x782   :  { %1832 = vmatprep.subr.mxu0 %v1775_v40 }
 0x783   :  { %1833 = vmatpush1.msra.mxu0 %v1774_v27 }
 0x784   :  { %1834 = vmatprep.subr.mxu0 %v1773_v45 }
 0x785   :  { %1835 = vmatpush1.msra.mxu0 %v1772_v33 }
 0x786   :  { %1836 = vmatprep.subr.mxu0 %v1771_v41 }
 0x787   :  { %1837 = vmatpush1.msra.mxu0 %v1770_v28 }
 0x788   :  { %1838 = vmatprep.subr.mxu0 %v1769_v22 }
 0x789   :  { %1839 = vmatpush1.msra.mxu0 %v1768_v57 }
 0x78a   :  { %1840 = vmatprep.subr.mxu0 %v1767_v49 }
 0x78b   :  { %1841 = vmatpush1.msra.mxu0 %v1766_v50 }
 0x82c   :  { %v1644_v53 = vpop.f32.mrf.mxu0  ;;  %v1715_v55 = vpop.f32.mrf.mxu1 }
 0x82d   :  { %v1645_v59 = vadd.f32 %v1644_v53, %v3755_v46  ;;  %v1716_v46 = vadd.f32 %v1715_v55, %v3049_v48  ;;  %v1798_v48 = vld [vmem:[%s3664_s7] sm:$0x3]  ;;  %s2701_s7 = smov [#allocation11]  }
 0x82e   :  { %v1646_v61 = vpop.f32.mrf.mxu0  ;;  %v2414_v63 = vpop.f32.mrf.mxu1  ;;  %v1807_v42 = vrot.slane %v1798_v48, %v3757_v24  ;;  %s1916_s13 = sshll.u32 %s2701_s7, 4  ;;  %s1917_s13 = int_to_ptr.vmem [resolvable:$true] %s1916_s13 }
 0x82f   :  { %v1720_v14 = vrot.slane %v1645_v59, 1  ;;  %v1647_v1 = vadd.f32 %v1646_v61, %v3040_v37  ;;  %v1740_v6 = vrot.slane %v1716_v46, 1  ;;  %s2641_s14 = scalar_lea.vmem %s1917_s13, 16  ;;  %s2645_s15 = scalar_lea.vmem %s1917_s13, 32 }
 0x830   :  { %p2642_p6 = scmp.ne.s32.totalorder %s1917_s13, %s2641_s14  ;;  %p2646_p7 = scmp.lt.s32.totalorder %s1917_s13, %s1917_s13 }
 0x831   :  { %v1722_v17 = vadd.f32 %v1720_v14, %v3037_v60  ;;  %v1730_v20 = vrot.slane %v1647_v1, 1  ;;  %p2647_p8 = scmp.lt.s32.totalorder %s2645_s15, %s2641_s14 }
 0x833   :  { %v1945_v2 = vmul.f32 -1.442695, %v1722_v17  ;;  %v1732_v3 = vadd.f32 %v1730_v20, %v3046_v25  ;;  %v1747_v25 = vrot.slane %v3630_v21, 7  ;;  %p2648_p9 = por %p2647_p8, %p2646_p7 }
 0x835   :  { %2497 = vpow2.f32 %v1945_v2  ;;  %v1946_v23 = vmul.f32 -1.442695, %v1732_v3  ;;  %p2649_p10 = pnand %p2648_p9, %p2642_p6 }
 0x837   :  { %2499 = vpow2.f32 %v1946_v23 }
 0x842   :  { %v2498_v4 = vpop.eup %2497 }
 0x843   :  { %v1726_v26 = vadd.f32 1.0, %v2498_v4 }
 0x844   :  { %v2500_v5 = vpop.eup %2499 }
 0x845   :  { %2501 = vrcp.f32 %v1726_v26  ;;  %v1736_v29 = vadd.f32 1.0, %v2500_v5 }
 0x847   :  { %2503 = vrcp.f32 %v1736_v29 }
 0x852   :  { %v2502_v30 = vpop.eup %2501 }
 0x853   :  { %v1742_v7 = vmul.f32 %v2502_v30, %v1740_v6 }
 0x854   :  { %v2504_v37 = vpop.eup %2503 }
 0x855   :  { %v1743_v60 = vadd.f32 %v1742_v7, %v3052_v51  ;;  %v1745_v56 = vsub.f32 1.0, %v2504_v37  ;;  %v1749_v0 = vmul.f32 %v2504_v37, %v1747_v25  ;;  %v1803_v51 = vrot.slane %v1798_v48, %v3756_v34 }
 0x857   :  { %2505 = vtanh.f32 %v1743_v60 }
 0x864   :  { %v2506_v19 = vpop.eup %2505 }
 0x865   :  { %v1746_v38 = vmul.f32 %v2506_v19, %v1745_v56 }
 0x867   :  { %v1750_v43 = vadd.f32 %v1749_v0, %v1746_v38 }
 0x869   :  { %v1764_v54 = vsel %vm1763_vm7, %v3635_v35, %v1750_v43  ;;  %1765 = vst [vmem:[#allocation11 - $0x7] sm:$0x80] %v1750_v43 }
 0x86a   :  { %1875 = vmatmul.mubr.f32.vlgmr.msra.gmra.mxu0 %v1764_v54 }
 0x92a   :  { %v1876_v52 = vpop.f32.mrf.mxu0 }
 0x92b   :  { %v1877_v21 = vadd.f32 %v1876_v52, %v1803_v51 }
 0x92c   :  { %v1878_v58 = vpop.f32.mrf.mxu0 }
 0x92d   :  { %v1879_v11 = vadd.f32 %v1878_v58, %v1807_v42 }
 0x92f   :  { %v1881_v16 = vmax.f32 %v1877_v21, %v1879_v11 }
 0x931   :  { %1882 = vmax.xlane.f32.xlu0 %v1881_v16 }
 0x9ba   :  { %v1883_v13 = vpop.xlane.xlu0 %1882 }
 0x9bb   :  { %v1884_v15 = vsub.f32 %v1877_v21, %v1883_v13  ;;  %v1885_v36 = vsub.f32 %v1879_v11, %v1883_v13 }
 0x9bd   :  { %v1886_v35 = vmul.f32 1.442695, %v1884_v15  ;;  %v1888_v9 = vmul.f32 1.442695, %v1885_v36 }
 0x9bf   :  { %2507 = vpow2.f32 %v1886_v35 }
 0x9c0   :  { %2509 = vpow2.f32 %v1888_v9 }
 0x9cc   :  { %v2508_v32 = vpop.eup %2507 }
 0x9cd   :  { %v2510_v10 = vpop.eup %2509 }
 0x9ce   :  { %v1890_v47 = vadd.f32 %v2510_v10, %v2508_v32 }
 0x9d0   :  { %1891 = vadd.xlane.f32.xlu0 %v1890_v47 }
 0x9d1   :  { %2652 = shalt.err (!%p2649_p10)
}
 0x9d2   :  { %1919 = dma.vmem_to_hbm [thread:$0]  %s1917_s13, 16, %s3666_s9, [#allocation12]  }
 0x9d3   :  { %s2702_s18 = smov [#allocation10]  }
 0x9d4   :  { %s1906_s19 = sshll.u32 %s2702_s18, 4  ;;  %s1907_s19 = int_to_ptr.vmem [resolvable:$true] %s1906_s19 }
 0x9d5   :  { %s2661_s20 = scalar_lea.vmem %s1907_s19, 256  ;;  %p2666_p12 = scmp.lt.s32.totalorder %s1907_s19, %s1907_s19 }
 0x9d6   :  { %p2662_p11 = scmp.ne.s32.totalorder %s1907_s19, %s2661_s20  ;;  %p2667_p13 = scmp.lt.s32.totalorder %s2661_s20, %s2661_s20 }
 0x9d8   :  { %p2668_p0 = por %p2667_p13, %p2666_p12 }
 0x9da   :  { %p2669_p1 = pnand %p2668_p0, %p2662_p11 }
 0xa59   :  { %v1892_v8 = vpop.xlane.xlu0 %1891 }
 0xa5a   :  { %2511 = vlog2.f32 %v1892_v8 }
 0xa67   :  { %v2512_v18 = vpop.eup %2511 }
 0xa68   :  { %v1894_v31 = vmul.f32 0.6931472, %v2512_v18 }
 0xa6a   :  { %v1895_v12 = vadd.f32 %v1894_v31, %v1883_v13 }
 0xa6c   :  { %v1896_v44 = vsub.f32 %v1877_v21, %v1895_v12  ;;  %v1897_v62 = vsub.f32 %v1879_v11, %v1895_v12 }
 0xa6e   :  { %1898 = vst [vmem:[#allocation10] sm:$0xff] %v1896_v44  ;;  %1899 = vst [vmem:[#allocation10 + $0x8] sm:$0xff] %v1897_v62 }
 0xa6f   :  { %2672 = shalt.err (!%p2669_p1)
}
 0xa70   :  { %1909 = dma.vmem_to_hbm [thread:$0]  %s1907_s19, 256, %s3665_s8, [#allocation4]  }
 0xa71   :  { %2687 = dma.done.wait [#allocation4], 256  }
 0xa72   :  { %2688 = vsyncadd [#allocation4], 4294967040 }
 0xa73   :  { %2689 = dma.done.wait [#allocation12], 16  }
 0xa74   :  { %2690 = vsyncadd [#allocation12], 4294967280 }
 0xa75   :  { %1926 = vsyncpa [#allocation3], 1 }
 0xa76   :  { %1927 = vsyncpa [#allocation6], 1 }
 0xa77   :  { %1928 = vsyncpa [#allocation9], 1 }
 0xa78   :  { %1929 = vsyncpa [#allocation4], 1 }
 0xa79   :  { %1930 = vsyncpa [#allocation12], 1 }

</bundles_post_ra>
